<compile_context>
chip_gen: v6e
topology: v6e:2x2x1
jax: 0.10.0
libtpu: 0.0.40
codegen_flags: <defaults>
</compile_context>

<pallas_src>
import math

import jax
import jax.numpy as jnp
import numpy as np
from jax.experimental import pallas as pl

# ---- problem sizes (small, consistent with the module) ----
B, T, D = 2, 8, 32          # batch, max_time_in, size
HEADS = 8                   # attention_heads (module default)
DK = D // HEADS             # per-head dim = 4
FF = 64                     # positionwise feed-forward hidden units
EPS = 1e-12                 # LayerNorm eps from the module
BT = B * T                  # batch folded into the token axis


def encoder_layer_kernel(x_ref, keep_ref,
                         ln1_g_ref, ln1_b_ref,
                         wqkv_ref, bqkv_ref,
                         wo3_ref, bo_ref,
                         ln2_g_ref, ln2_b_ref,
                         w1_ref, b1_ref, w2_ref, b2_ref,
                         out_ref):
    x = x_ref[...].astype(jnp.float32)          # (BT, D)
    keep = keep_ref[...] > 0.0                  # (BT, BT): same-batch AND key-valid

    def layer_norm(v, g_ref, b_ref):
        mu = jnp.mean(v, axis=-1, keepdims=True)
        var = jnp.mean((v - mu) ** 2, axis=-1, keepdims=True)
        return (v - mu) * jax.lax.rsqrt(var + EPS) * g_ref[...] + b_ref[...]

    # ---- block 1: pre-norm multi-head self-attention + residual ----
    residual = x
    xn = layer_norm(x, ln1_g_ref, ln1_b_ref)

    # fused QKV projection: one (BT, D) x (D, 3D) MXU pass
    qkv = jnp.dot(xn, wqkv_ref[...], preferred_element_type=jnp.float32) + bqkv_ref[...]
    q, k, v = qkv[:, :D], qkv[:, D:2 * D], qkv[:, 2 * D:]

    def split_heads(t):     # (BT, D) -> (H, BT, DK): static lane slices + leading-dim stack
        return jnp.stack([t[:, h * DK:(h + 1) * DK] for h in range(HEADS)], axis=0)

    qh, kh, vh = split_heads(q), split_heads(k), split_heads(v)

    scale = 1.0 / math.sqrt(DK)
    neg = jnp.finfo(jnp.float32).min            # torch masked_fill with dtype min
    # batched over heads: (H, BT, BT)
    scores = jnp.einsum('hqd,hkd->hqk', qh, kh,
                        preferred_element_type=jnp.float32) * scale
    scores = jnp.where(keep[None, :, :], scores, neg)
    scores = scores - jnp.max(scores, axis=-1, keepdims=True)
    e = jnp.exp(scores)
    denom = jnp.sum(e, axis=-1, keepdims=True)
    attn = e * pl.reciprocal(denom, approx=True)          # EUP reciprocal
    attn = jnp.where(keep[None, :, :], attn, 0.0)         # zero padded keys (ESPnet semantics)

    ctx = jnp.einsum('hqk,hkd->hqd', attn, vh,
                     preferred_element_type=jnp.float32)  # (H, BT, DK)
    # output projection as per-head batched matmul + sum over heads (no lane concatenate)
    att = jnp.einsum('hqd,hdo->hqo', ctx, wo3_ref[...],
                     preferred_element_type=jnp.float32)  # (H, BT, D)
    att = jnp.sum(att, axis=0) + bo_ref[...]              # (BT, D)
    x = residual + att                                    # dropout == identity (eval mode)

    # ---- block 2: pre-norm positionwise feed-forward + residual ----
    residual = x
    xn2 = layer_norm(x, ln2_g_ref, ln2_b_ref)
    h1 = jnp.maximum(
        jnp.dot(xn2, w1_ref[...], preferred_element_type=jnp.float32) + b1_ref[...], 0.0)
    ffn = jnp.dot(h1, w2_ref[...], preferred_element_type=jnp.float32) + b2_ref[...]
    out_ref[...] = (residual + ffn).astype(out_ref.dtype)  # single full-block store


def encoder_layer(x, pos_k, pos_v, mask_f, params):
    """Mirrors EncoderLayer.forward(x, pos_k, pos_v, mask) -> (x, mask)."""
    assert pos_k is None and pos_v is None, "relative-position path not supported here"

    # host-side packing (fused by XLA, zero in-kernel cost):
    wqkv = jnp.concatenate([params["wq"], params["wk"], params["wv"]], axis=1)   # (D, 3D)
    bqkv = jnp.concatenate([params["bq"], params["bk"], params["bv"]], axis=1)   # (1, 3D)
    wo3 = params["wo"].reshape(HEADS, DK, D)                                     # (H, DK, D)

    # fold batch into the token axis: keep[i, j] = same-batch(i, j) AND key j is valid
    tok_batch = jnp.repeat(jnp.arange(B, dtype=jnp.int32), T)                    # (BT,)
    key_valid = mask_f.reshape(BT) > 0.0                                         # (BT,)
    keep_f = ((tok_batch[:, None] == tok_batch[None, :]) &
              key_valid[None, :]).astype(jnp.float32)                            # (BT, BT)

    x2 = x.reshape(BT, D)
    out2 = pl.pallas_call(
        encoder_layer_kernel,
        out_shape=jax.ShapeDtypeStruct((BT, D), jnp.float32),
        # no grid: the whole working set (<10 KiB) lives in VMEM for a single invocation.
    )(x2, keep_f,
      params["ln1_g"], params["ln1_b"],
      wqkv, bqkv, wo3, params["bo"],
      params["ln2_g"], params["ln2_b"],
      params["w1"], params["b1"], params["w2"], params["b2"])
    return out2.reshape(B, T, D), mask_f


# ---------------- pure-JAX reference for correctness check ----------------
def reference_forward(x, mask_f, p):
    def ln(v, g, b):
        mu = jnp.mean(v, axis=-1, keepdims=True)
        var = jnp.mean((v - mu) ** 2, axis=-1, keepdims=True)
        return (v - mu) / jnp.sqrt(var + EPS) * g + b

    keep = mask_f > 0.0                                     # (B, 1, T)
    residual = x
    xn = ln(x, p["ln1_g"], p["ln1_b"])
    q = xn @ p["wq"] + p["bq"]
    k = xn @ p["wk"] + p["bk"]
    v = xn @ p["wv"] + p["bv"]
    q = q.reshape(B, T, HEADS, DK).transpose(0, 2, 1, 3)
    k = k.reshape(B, T, HEADS, DK).transpose(0, 2, 1, 3)
    v = v.reshape(B, T, HEADS, DK).transpose(0, 2, 1, 3)
    scores = jnp.einsum("bhqd,bhkd->bhqk", q, k) / math.sqrt(DK)
    scores = jnp.where(keep[:, None, :, :], scores, jnp.finfo(jnp.float32).min)
    attn = jax.nn.softmax(scores, axis=-1)
    attn = jnp.where(keep[:, None, :, :], attn, 0.0)
    att = jnp.einsum("bhqk,bhkd->bhqd", attn, v).transpose(0, 2, 1, 3).reshape(B, T, D)
    att = att @ p["wo"] + p["bo"]
    x = residual + att
    residual = x
    xn2 = ln(x, p["ln2_g"], p["ln2_b"])
    ffn = jnp.maximum(xn2 @ p["w1"] + p["b1"], 0.0) @ p["w2"] + p["b2"]
    return residual + ffn


def make_params(key):
    ks = jax.random.split(key, 8)
    s = 0.05
    return {
        "ln1_g": jnp.ones((1, D), jnp.float32),
        "ln1_b": jnp.zeros((1, D), jnp.float32),
        "ln2_g": jnp.ones((1, D), jnp.float32),
        "ln2_b": jnp.zeros((1, D), jnp.float32),
        "wq": s * jax.random.normal(ks[0], (D, D), jnp.float32),
        "bq": s * jax.random.normal(ks[1], (1, D), jnp.float32),
        "wk": s * jax.random.normal(ks[2], (D, D), jnp.float32),
        "bk": jnp.zeros((1, D), jnp.float32),
        "wv": s * jax.random.normal(ks[3], (D, D), jnp.float32),
        "bv": jnp.zeros((1, D), jnp.float32),
        "wo": s * jax.random.normal(ks[4], (D, D), jnp.float32),
        "bo": jnp.zeros((1, D), jnp.float32),
        "w1": s * jax.random.normal(ks[5], (D, FF), jnp.float32),
        "b1": s * jax.random.normal(ks[6], (1, FF), jnp.float32),
        "w2": s * jax.random.normal(ks[7], (FF, D), jnp.float32),
        "b2": jnp.zeros((1, D), jnp.float32),
    }


if __name__ == "__main__":
    key = jax.random.PRNGKey(0)
    kx, kp = jax.random.split(key)
    x = jax.random.normal(kx, (B, T, D), jnp.float32)
    # mask: batch 0 fully valid, batch 1 has last 2 frames padded
    mask_np = np.ones((B, 1, T), np.float32)
    mask_np[1, 0, 6:] = 0.0
    mask_f = jnp.asarray(mask_np)
    params = make_params(kp)

    out, out_mask = encoder_layer(x, None, None, mask_f, params)
    out = jax.block_until_ready(out)

    ref = jax.block_until_ready(reference_forward(x, mask_f, params))
    # tolerance slightly relaxed vs fp32-exact because of the approximate (EUP) softmax reciprocal
    np.testing.assert_allclose(np.asarray(out), np.asarray(ref), rtol=2e-3, atol=2e-3)
    print("KERNEL_OK")
</pallas_src>

<mosaic_0001>
module attributes {stable_mosaic.version = 11 : i64} {
  func.func @encoder_layer_kernel(%arg0: memref<16x32xf32, #tpu.memory_space<vmem>>, %arg1: memref<16x16xf32, #tpu.memory_space<vmem>>, %arg2: memref<1x32xf32, #tpu.memory_space<vmem>>, %arg3: memref<1x32xf32, #tpu.memory_space<vmem>>, %arg4: memref<32x96xf32, #tpu.memory_space<vmem>>, %arg5: memref<1x96xf32, #tpu.memory_space<vmem>>, %arg6: memref<8x4x32xf32, #tpu.memory_space<vmem>>, %arg7: memref<1x32xf32, #tpu.memory_space<vmem>>, %arg8: memref<1x32xf32, #tpu.memory_space<vmem>>, %arg9: memref<1x32xf32, #tpu.memory_space<vmem>>, %arg10: memref<32x64xf32, #tpu.memory_space<vmem>>, %arg11: memref<1x64xf32, #tpu.memory_space<vmem>>, %arg12: memref<64x32xf32, #tpu.memory_space<vmem>>, %arg13: memref<1x32xf32, #tpu.memory_space<vmem>>, %arg14: memref<16x32xf32, #tpu.memory_space<vmem>>) attributes {dimension_semantics = [], scalar_prefetch = 0 : i64, scratch_operands = 0 : i64, tpu.core_type = #tpu.core_type<tc>} {
    %c0 = arith.constant 0 : index
    %c0_0 = arith.constant 0 : index
    %0 = vector.load %arg0[%c0, %c0_0] : memref<16x32xf32, #tpu.memory_space<vmem>>, vector<16x32xf32>
    %c0_1 = arith.constant 0 : index
    %c0_2 = arith.constant 0 : index
    %1 = vector.load %arg1[%c0_1, %c0_2] : memref<16x16xf32, #tpu.memory_space<vmem>>, vector<16x16xf32>
    %cst = arith.constant 0.000000e+00 : f32
    %2 = vector.broadcast %cst : f32 to vector<16x16xf32>
    %3 = arith.cmpf ogt, %1, %2 : vector<16x16xf32>
    %cst_3 = arith.constant dense<0.000000e+00> : vector<16xf32>
    %4 = vector.multi_reduction <add>, %0, %cst_3 [1] : vector<16x32xf32> to vector<16xf32>
    %5 = vector.shape_cast %4 : vector<16xf32> to vector<16x1xf32>
    %cst_4 = arith.constant 3.200000e+01 : f32
    %6 = vector.broadcast %cst_4 : f32 to vector<16x1xf32>
    %7 = arith.divf %5, %6 : vector<16x1xf32>
    %8 = vector.broadcast %7 : vector<16x1xf32> to vector<16x32xf32>
    %9 = arith.subf %0, %8 : vector<16x32xf32>
    %10 = arith.mulf %9, %9 : vector<16x32xf32>
    %cst_5 = arith.constant dense<0.000000e+00> : vector<16xf32>
    %11 = vector.multi_reduction <add>, %10, %cst_5 [1] : vector<16x32xf32> to vector<16xf32>
    %12 = vector.shape_cast %11 : vector<16xf32> to vector<16x1xf32>
    %cst_6 = arith.constant 3.200000e+01 : f32
    %13 = vector.broadcast %cst_6 : f32 to vector<16x1xf32>
    %14 = arith.divf %12, %13 : vector<16x1xf32>
    %15 = vector.broadcast %7 : vector<16x1xf32> to vector<16x32xf32>
    %16 = arith.subf %0, %15 : vector<16x32xf32>
    %cst_7 = arith.constant 9.99999996E-13 : f32
    %17 = vector.broadcast %cst_7 : f32 to vector<16x1xf32>
    %18 = arith.addf %14, %17 : vector<16x1xf32>
    %19 = math.rsqrt %18 : vector<16x1xf32>
    %20 = vector.broadcast %19 : vector<16x1xf32> to vector<16x32xf32>
    %21 = arith.mulf %16, %20 : vector<16x32xf32>
    %c0_8 = arith.constant 0 : index
    %c0_9 = arith.constant 0 : index
    %22 = vector.load %arg2[%c0_8, %c0_9] : memref<1x32xf32, #tpu.memory_space<vmem>>, vector<1x32xf32>
    %23 = vector.broadcast %22 : vector<1x32xf32> to vector<16x32xf32>
    %24 = arith.mulf %21, %23 : vector<16x32xf32>
    %c0_10 = arith.constant 0 : index
    %c0_11 = arith.constant 0 : index
    %25 = vector.load %arg3[%c0_10, %c0_11] : memref<1x32xf32, #tpu.memory_space<vmem>>, vector<1x32xf32>
    %26 = vector.broadcast %25 : vector<1x32xf32> to vector<16x32xf32>
    %27 = arith.addf %24, %26 : vector<16x32xf32>
    %c0_12 = arith.constant 0 : index
    %c0_13 = arith.constant 0 : index
    %28 = vector.load %arg4[%c0_12, %c0_13] : memref<32x96xf32, #tpu.memory_space<vmem>>, vector<32x96xf32>
    %cst_14 = arith.constant dense<0.000000e+00> : vector<16x96xf32>
    %29 = tpu.matmul %27, %28, %cst_14 {dimension_numbers = #tpu.dot_dimension_numbers<[1], [0], [0], [1], [0, 0, 1, 1], [], []>} : vector<16x32xf32>, vector<32x96xf32>, vector<16x96xf32> -> vector<16x96xf32>
    %c0_15 = arith.constant 0 : index
    %c0_16 = arith.constant 0 : index
    %30 = vector.load %arg5[%c0_15, %c0_16] : memref<1x96xf32, #tpu.memory_space<vmem>>, vector<1x96xf32>
    %31 = vector.broadcast %30 : vector<1x96xf32> to vector<16x96xf32>
    %32 = arith.addf %29, %31 : vector<16x96xf32>
    %33 = vector.extract_strided_slice %32 {offsets = [0, 0], sizes = [16, 32], strides = [1, 1]} : vector<16x96xf32> to vector<16x32xf32>
    %34 = vector.extract_strided_slice %32 {offsets = [0, 32], sizes = [16, 32], strides = [1, 1]} : vector<16x96xf32> to vector<16x32xf32>
    %35 = vector.extract_strided_slice %32 {offsets = [0, 64], sizes = [16, 32], strides = [1, 1]} : vector<16x96xf32> to vector<16x32xf32>
    %36 = vector.extract_strided_slice %33 {offsets = [0, 0], sizes = [16, 4], strides = [1, 1]} : vector<16x32xf32> to vector<16x4xf32>
    %37 = vector.extract_strided_slice %33 {offsets = [0, 4], sizes = [16, 4], strides = [1, 1]} : vector<16x32xf32> to vector<16x4xf32>
    %38 = vector.extract_strided_slice %33 {offsets = [0, 8], sizes = [16, 4], strides = [1, 1]} : vector<16x32xf32> to vector<16x4xf32>
    %39 = vector.extract_strided_slice %33 {offsets = [0, 12], sizes = [16, 4], strides = [1, 1]} : vector<16x32xf32> to vector<16x4xf32>
    %40 = vector.extract_strided_slice %33 {offsets = [0, 16], sizes = [16, 4], strides = [1, 1]} : vector<16x32xf32> to vector<16x4xf32>
    %41 = vector.extract_strided_slice %33 {offsets = [0, 20], sizes = [16, 4], strides = [1, 1]} : vector<16x32xf32> to vector<16x4xf32>
    %42 = vector.extract_strided_slice %33 {offsets = [0, 24], sizes = [16, 4], strides = [1, 1]} : vector<16x32xf32> to vector<16x4xf32>
    %43 = vector.extract_strided_slice %33 {offsets = [0, 28], sizes = [16, 4], strides = [1, 1]} : vector<16x32xf32> to vector<16x4xf32>
    %44 = vector.shape_cast %36 : vector<16x4xf32> to vector<1x16x4xf32>
    %45 = vector.shape_cast %37 : vector<16x4xf32> to vector<1x16x4xf32>
    %46 = vector.shape_cast %38 : vector<16x4xf32> to vector<1x16x4xf32>
    %47 = vector.shape_cast %39 : vector<16x4xf32> to vector<1x16x4xf32>
    %48 = vector.shape_cast %40 : vector<16x4xf32> to vector<1x16x4xf32>
    %49 = vector.shape_cast %41 : vector<16x4xf32> to vector<1x16x4xf32>
    %50 = vector.shape_cast %42 : vector<16x4xf32> to vector<1x16x4xf32>
    %51 = vector.shape_cast %43 : vector<16x4xf32> to vector<1x16x4xf32>
    %52 = tpu.concatenate %44, %45, %46, %47, %48, %49, %50, %51 in 0 : vector<1x16x4xf32>, vector<1x16x4xf32>, vector<1x16x4xf32>, vector<1x16x4xf32>, vector<1x16x4xf32>, vector<1x16x4xf32>, vector<1x16x4xf32>, vector<1x16x4xf32> -> vector<8x16x4xf32>
    %53 = vector.extract_strided_slice %34 {offsets = [0, 0], sizes = [16, 4], strides = [1, 1]} : vector<16x32xf32> to vector<16x4xf32>
    %54 = vector.extract_strided_slice %34 {offsets = [0, 4], sizes = [16, 4], strides = [1, 1]} : vector<16x32xf32> to vector<16x4xf32>
    %55 = vector.extract_strided_slice %34 {offsets = [0, 8], sizes = [16, 4], strides = [1, 1]} : vector<16x32xf32> to vector<16x4xf32>
    %56 = vector.extract_strided_slice %34 {offsets = [0, 12], sizes = [16, 4], strides = [1, 1]} : vector<16x32xf32> to vector<16x4xf32>
    %57 = vector.extract_strided_slice %34 {offsets = [0, 16], sizes = [16, 4], strides = [1, 1]} : vector<16x32xf32> to vector<16x4xf32>
    %58 = vector.extract_strided_slice %34 {offsets = [0, 20], sizes = [16, 4], strides = [1, 1]} : vector<16x32xf32> to vector<16x4xf32>
    %59 = vector.extract_strided_slice %34 {offsets = [0, 24], sizes = [16, 4], strides = [1, 1]} : vector<16x32xf32> to vector<16x4xf32>
    %60 = vector.extract_strided_slice %34 {offsets = [0, 28], sizes = [16, 4], strides = [1, 1]} : vector<16x32xf32> to vector<16x4xf32>
    %61 = vector.shape_cast %53 : vector<16x4xf32> to vector<1x16x4xf32>
    %62 = vector.shape_cast %54 : vector<16x4xf32> to vector<1x16x4xf32>
    %63 = vector.shape_cast %55 : vector<16x4xf32> to vector<1x16x4xf32>
    %64 = vector.shape_cast %56 : vector<16x4xf32> to vector<1x16x4xf32>
    %65 = vector.shape_cast %57 : vector<16x4xf32> to vector<1x16x4xf32>
    %66 = vector.shape_cast %58 : vector<16x4xf32> to vector<1x16x4xf32>
    %67 = vector.shape_cast %59 : vector<16x4xf32> to vector<1x16x4xf32>
    %68 = vector.shape_cast %60 : vector<16x4xf32> to vector<1x16x4xf32>
    %69 = tpu.concatenate %61, %62, %63, %64, %65, %66, %67, %68 in 0 : vector<1x16x4xf32>, vector<1x16x4xf32>, vector<1x16x4xf32>, vector<1x16x4xf32>, vector<1x16x4xf32>, vector<1x16x4xf32>, vector<1x16x4xf32>, vector<1x16x4xf32> -> vector<8x16x4xf32>
    %70 = vector.extract_strided_slice %35 {offsets = [0, 0], sizes = [16, 4], strides = [1, 1]} : vector<16x32xf32> to vector<16x4xf32>
    %71 = vector.extract_strided_slice %35 {offsets = [0, 4], sizes = [16, 4], strides = [1, 1]} : vector<16x32xf32> to vector<16x4xf32>
    %72 = vector.extract_strided_slice %35 {offsets = [0, 8], sizes = [16, 4], strides = [1, 1]} : vector<16x32xf32> to vector<16x4xf32>
    %73 = vector.extract_strided_slice %35 {offsets = [0, 12], sizes = [16, 4], strides = [1, 1]} : vector<16x32xf32> to vector<16x4xf32>
    %74 = vector.extract_strided_slice %35 {offsets = [0, 16], sizes = [16, 4], strides = [1, 1]} : vector<16x32xf32> to vector<16x4xf32>
    %75 = vector.extract_strided_slice %35 {offsets = [0, 20], sizes = [16, 4], strides = [1, 1]} : vector<16x32xf32> to vector<16x4xf32>
    %76 = vector.extract_strided_slice %35 {offsets = [0, 24], sizes = [16, 4], strides = [1, 1]} : vector<16x32xf32> to vector<16x4xf32>
    %77 = vector.extract_strided_slice %35 {offsets = [0, 28], sizes = [16, 4], strides = [1, 1]} : vector<16x32xf32> to vector<16x4xf32>
    %78 = vector.shape_cast %70 : vector<16x4xf32> to vector<1x16x4xf32>
    %79 = vector.shape_cast %71 : vector<16x4xf32> to vector<1x16x4xf32>
    %80 = vector.shape_cast %72 : vector<16x4xf32> to vector<1x16x4xf32>
    %81 = vector.shape_cast %73 : vector<16x4xf32> to vector<1x16x4xf32>
    %82 = vector.shape_cast %74 : vector<16x4xf32> to vector<1x16x4xf32>
    %83 = vector.shape_cast %75 : vector<16x4xf32> to vector<1x16x4xf32>
    %84 = vector.shape_cast %76 : vector<16x4xf32> to vector<1x16x4xf32>
    %85 = vector.shape_cast %77 : vector<16x4xf32> to vector<1x16x4xf32>
    %86 = tpu.concatenate %78, %79, %80, %81, %82, %83, %84, %85 in 0 : vector<1x16x4xf32>, vector<1x16x4xf32>, vector<1x16x4xf32>, vector<1x16x4xf32>, vector<1x16x4xf32>, vector<1x16x4xf32>, vector<1x16x4xf32>, vector<1x16x4xf32> -> vector<8x16x4xf32>
    "tpu.trace_start"() <{level = 10 : i32, message = "hqd,hkd->hqk"}> : () -> ()
    %cst_17 = arith.constant dense<0.000000e+00> : vector<8x16x16xf32>
    %87 = tpu.matmul %52, %69, %cst_17 {dimension_numbers = #tpu.dot_dimension_numbers<[2], [2], [1], [1], [0, 0, 0, 1, 1, 1], [0], [0]>} : vector<8x16x4xf32>, vector<8x16x4xf32>, vector<8x16x16xf32> -> vector<8x16x16xf32>
    "tpu.trace_stop"() : () -> ()
    %cst_18 = arith.constant 5.000000e-01 : f32
    %88 = vector.broadcast %cst_18 : f32 to vector<8x16x16xf32>
    %89 = arith.mulf %87, %88 : vector<8x16x16xf32>
    %90 = vector.shape_cast %3 : vector<16x16xi1> to vector<1x16x16xi1>
    %cst_19 = arith.constant -3.40282347E+38 : f32
    %91 = vector.shape_cast %90 : vector<1x16x16xi1> to vector<1x16x16xi1>
    %92 = vector.broadcast %91 : vector<1x16x16xi1> to vector<8x16x16xi1>
    %93 = vector.broadcast %cst_19 : f32 to vector<8x16x16xf32>
    %94 = arith.select %92, %89, %93 : vector<8x16x16xi1>, vector<8x16x16xf32>
    %cst_20 = arith.constant dense<0xFF800000> : vector<8x16xf32>
    %95 = vector.multi_reduction <maximumf>, %94, %cst_20 [2] : vector<8x16x16xf32> to vector<8x16xf32>
    %96 = vector.shape_cast %95 : vector<8x16xf32> to vector<8x16x1xf32>
    %97 = vector.broadcast %96 : vector<8x16x1xf32> to vector<8x16x16xf32>
    %98 = arith.subf %94, %97 : vector<8x16x16xf32>
    %99 = math.exp %98 : vector<8x16x16xf32>
    %cst_21 = arith.constant dense<0.000000e+00> : vector<8x16xf32>
    %100 = vector.multi_reduction <add>, %99, %cst_21 [2] : vector<8x16x16xf32> to vector<8x16xf32>
    %101 = vector.shape_cast %100 : vector<8x16xf32> to vector<8x16x1xf32>
    %102 = tpu.reciprocal %101 {approx = true} : vector<8x16x1xf32> -> vector<8x16x1xf32>
    %103 = vector.broadcast %102 : vector<8x16x1xf32> to vector<8x16x16xf32>
    %104 = arith.mulf %99, %103 : vector<8x16x16xf32>
    %105 = vector.shape_cast %3 : vector<16x16xi1> to vector<1x16x16xi1>
    %cst_22 = arith.constant 0.000000e+00 : f32
    %106 = vector.shape_cast %105 : vector<1x16x16xi1> to vector<1x16x16xi1>
    %107 = vector.broadcast %106 : vector<1x16x16xi1> to vector<8x16x16xi1>
    %108 = vector.broadcast %cst_22 : f32 to vector<8x16x16xf32>
    %109 = arith.select %107, %104, %108 : vector<8x16x16xi1>, vector<8x16x16xf32>
    "tpu.trace_start"() <{level = 10 : i32, message = "hqk,hkd->hqd"}> : () -> ()
    %cst_23 = arith.constant dense<0.000000e+00> : vector<8x16x4xf32>
    %110 = tpu.matmul %109, %86, %cst_23 {dimension_numbers = #tpu.dot_dimension_numbers<[2], [1], [1], [2], [0, 0, 0, 1, 1, 2], [0], [0]>} : vector<8x16x16xf32>, vector<8x16x4xf32>, vector<8x16x4xf32> -> vector<8x16x4xf32>
    "tpu.trace_stop"() : () -> ()
    %c0_24 = arith.constant 0 : index
    %c0_25 = arith.constant 0 : index
    %c0_26 = arith.constant 0 : index
    %111 = vector.load %arg6[%c0_24, %c0_25, %c0_26] : memref<8x4x32xf32, #tpu.memory_space<vmem>>, vector<8x4x32xf32>
    "tpu.trace_start"() <{level = 10 : i32, message = "hqd,hdo->hqo"}> : () -> ()
    %cst_27 = arith.constant dense<0.000000e+00> : vector<8x16x32xf32>
    %112 = tpu.matmul %110, %111, %cst_27 {dimension_numbers = #tpu.dot_dimension_numbers<[2], [1], [1], [2], [0, 0, 0, 1, 1, 2], [0], [0]>} : vector<8x16x4xf32>, vector<8x4x32xf32>, vector<8x16x32xf32> -> vector<8x16x32xf32>
    "tpu.trace_stop"() : () -> ()
    %cst_28 = arith.constant dense<0.000000e+00> : vector<16x32xf32>
    %113 = vector.multi_reduction <add>, %112, %cst_28 [0] : vector<8x16x32xf32> to vector<16x32xf32>
    %c0_29 = arith.constant 0 : index
    %c0_30 = arith.constant 0 : index
    %114 = vector.load %arg7[%c0_29, %c0_30] : memref<1x32xf32, #tpu.memory_space<vmem>>, vector<1x32xf32>
    %115 = vector.broadcast %114 : vector<1x32xf32> to vector<16x32xf32>
    %116 = arith.addf %113, %115 : vector<16x32xf32>
    %117 = arith.addf %0, %116 : vector<16x32xf32>
    %cst_31 = arith.constant dense<0.000000e+00> : vector<16xf32>
    %118 = vector.multi_reduction <add>, %117, %cst_31 [1] : vector<16x32xf32> to vector<16xf32>
    %119 = vector.shape_cast %118 : vector<16xf32> to vector<16x1xf32>
    %cst_32 = arith.constant 3.200000e+01 : f32
    %120 = vector.broadcast %cst_32 : f32 to vector<16x1xf32>
    %121 = arith.divf %119, %120 : vector<16x1xf32>
    %122 = vector.broadcast %121 : vector<16x1xf32> to vector<16x32xf32>
    %123 = arith.subf %117, %122 : vector<16x32xf32>
    %124 = arith.mulf %123, %123 : vector<16x32xf32>
    %cst_33 = arith.constant dense<0.000000e+00> : vector<16xf32>
    %125 = vector.multi_reduction <add>, %124, %cst_33 [1] : vector<16x32xf32> to vector<16xf32>
    %126 = vector.shape_cast %125 : vector<16xf32> to vector<16x1xf32>
    %cst_34 = arith.constant 3.200000e+01 : f32
    %127 = vector.broadcast %cst_34 : f32 to vector<16x1xf32>
    %128 = arith.divf %126, %127 : vector<16x1xf32>
    %129 = vector.broadcast %121 : vector<16x1xf32> to vector<16x32xf32>
    %130 = arith.subf %117, %129 : vector<16x32xf32>
    %cst_35 = arith.constant 9.99999996E-13 : f32
    %131 = vector.broadcast %cst_35 : f32 to vector<16x1xf32>
    %132 = arith.addf %128, %131 : vector<16x1xf32>
    %133 = math.rsqrt %132 : vector<16x1xf32>
    %134 = vector.broadcast %133 : vector<16x1xf32> to vector<16x32xf32>
    %135 = arith.mulf %130, %134 : vector<16x32xf32>
    %c0_36 = arith.constant 0 : index
    %c0_37 = arith.constant 0 : index
    %136 = vector.load %arg8[%c0_36, %c0_37] : memref<1x32xf32, #tpu.memory_space<vmem>>, vector<1x32xf32>
    %137 = vector.broadcast %136 : vector<1x32xf32> to vector<16x32xf32>
    %138 = arith.mulf %135, %137 : vector<16x32xf32>
    %c0_38 = arith.constant 0 : index
    %c0_39 = arith.constant 0 : index
    %139 = vector.load %arg9[%c0_38, %c0_39] : memref<1x32xf32, #tpu.memory_space<vmem>>, vector<1x32xf32>
    %140 = vector.broadcast %139 : vector<1x32xf32> to vector<16x32xf32>
    %141 = arith.addf %138, %140 : vector<16x32xf32>
    %c0_40 = arith.constant 0 : index
    %c0_41 = arith.constant 0 : index
    %142 = vector.load %arg10[%c0_40, %c0_41] : memref<32x64xf32, #tpu.memory_space<vmem>>, vector<32x64xf32>
    %cst_42 = arith.constant dense<0.000000e+00> : vector<16x64xf32>
    %143 = tpu.matmul %141, %142, %cst_42 {dimension_numbers = #tpu.dot_dimension_numbers<[1], [0], [0], [1], [0, 0, 1, 1], [], []>} : vector<16x32xf32>, vector<32x64xf32>, vector<16x64xf32> -> vector<16x64xf32>
    %c0_43 = arith.constant 0 : index
    %c0_44 = arith.constant 0 : index
    %144 = vector.load %arg11[%c0_43, %c0_44] : memref<1x64xf32, #tpu.memory_space<vmem>>, vector<1x64xf32>
    %145 = vector.broadcast %144 : vector<1x64xf32> to vector<16x64xf32>
    %146 = arith.addf %143, %145 : vector<16x64xf32>
    %cst_45 = arith.constant 0.000000e+00 : f32
    %147 = vector.broadcast %cst_45 : f32 to vector<16x64xf32>
    %148 = arith.maximumf %146, %147 : vector<16x64xf32>
    %c0_46 = arith.constant 0 : index
    %c0_47 = arith.constant 0 : index
    %149 = vector.load %arg12[%c0_46, %c0_47] : memref<64x32xf32, #tpu.memory_space<vmem>>, vector<64x32xf32>
    %cst_48 = arith.constant dense<0.000000e+00> : vector<16x32xf32>
    %150 = tpu.matmul %148, %149, %cst_48 {dimension_numbers = #tpu.dot_dimension_numbers<[1], [0], [0], [1], [0, 0, 1, 1], [], []>} : vector<16x64xf32>, vector<64x32xf32>, vector<16x32xf32> -> vector<16x32xf32>
    %c0_49 = arith.constant 0 : index
    %c0_50 = arith.constant 0 : index
    %151 = vector.load %arg13[%c0_49, %c0_50] : memref<1x32xf32, #tpu.memory_space<vmem>>, vector<1x32xf32>
    %152 = vector.broadcast %151 : vector<1x32xf32> to vector<16x32xf32>
    %153 = arith.addf %150, %152 : vector<16x32xf32>
    %154 = arith.addf %117, %153 : vector<16x32xf32>
    %c0_51 = arith.constant 0 : index
    %c0_52 = arith.constant 0 : index
    %155 = vector.load %arg14[%c0_51, %c0_52] : memref<16x32xf32, #tpu.memory_space<vmem>>, vector<16x32xf32>
    tpu.vector_store %arg14[%c0_51, %c0_52], %154 {strides = array<i32>} : memref<16x32xf32, #tpu.memory_space<vmem>>, vector<16x32xf32>,
    return
  }
}

</mosaic_0001>

<bundles_post_ra>
// kernel: tpu_custom_call.1
= control target key start
LH: loop header
LB: loop body
LE: loop exit
PB: predicated region body
PF: predicated region fallthrough
CT: control target
= control target key end

     0   :  { %19 = vsyncpa [#allocation3], 0  ;;  %s4104_s0 = inlined_call_operand.hbm [shape: f32[16,32], index: 0, kind: input, shape index: {}]   ;;  %s4105_s1 = inlined_call_operand.hbm [shape: f32[16,16], index: 1, kind: input, shape index: {}]   ;;  %s4106_s2 = inlined_call_operand.vmem [shape: f32[1,32], index: 2, kind: input, shape index: {}]   ;;  %s4107_s3 = inlined_call_operand.vmem [shape: f32[1,32], index: 3, kind: input, shape index: {}]   ;;  %s4108_s4 = inlined_call_operand.vmem [shape: f32[32,96], index: 4, kind: input, shape index: {}]   ;;  %s4109_s5 = inlined_call_operand.vmem [shape: f32[1,96], index: 5, kind: input, shape index: {}]   ;;  %s4110_s6 = inlined_call_operand.vmem [shape: f32[8,4,32], index: 6, kind: input, shape index: {}]   ;;  %s4111_s7 = inlined_call_operand.vmem [shape: f32[1,32], index: 7, kind: input, shape index: {}]   ;;  %s4112_s8 = inlined_call_operand.vmem [shape: f32[1,32], index: 8, kind: input, shape index: {}]   ;;  %s4113_s9 = inlined_call_operand.vmem [shape: f32[1,32], index: 9, kind: input, shape index: {}]   ;;  %s4114_s10 = inlined_call_operand.vmem [shape: f32[32,64], index: 10, kind: input, shape index: {}]   ;;  %s4115_s11 = inlined_call_operand.vmem [shape: f32[1,64], index: 11, kind: input, shape index: {}]   ;;  %s4116_s12 = inlined_call_operand.vmem [shape: f32[64,32], index: 12, kind: input, shape index: {}]   ;;  %s4117_s13 = inlined_call_operand.vmem [shape: f32[1,32], index: 13, kind: input, shape index: {}]   ;;  %s4118_s14 = inlined_call_operand.hbm [shape: f32[16,32], index: 14, kind: output, shape index: {}]  }
   0x1   :  { %20 = vsyncpa [#allocation6], 0 }
   0x2   :  { %21 = vsyncpa [#allocation4], 0  ;;  %s3394_s29 = smov [#allocation2]  }
   0x3   :  { %s27_s30 = sshll.u32 %s3394_s29, 4  ;;  %s28_s30 = int_to_ptr.vmem [resolvable:$true] %s27_s30 }
   0x4   :  { %s3336_s15 = scalar_lea.vmem %s28_s30, 256  ;;  %p3341_p1 = scmp.lt.s32.totalorder %s28_s30, %s28_s30 }
   0x5   :  { %p3337_p0 = scmp.ne.s32.totalorder %s28_s30, %s3336_s15  ;;  %p3342_p2 = scmp.lt.s32.totalorder %s3336_s15, %s3336_s15 }
   0x7   :  { %p3343_p3 = por %p3342_p2, %p3341_p1 }
   0x9   :  { %p3344_p4 = pnand %p3343_p3, %p3337_p0 }
   0xb   :  { %3347 = shalt.err (!%p3344_p4)
}
   0xc   :  { %s3395_s16 = smov 128   ;;  %s3396_s17 = smov 8  }
   0xd   :  { %33 = dma.hbm_to_vmem [thread:$0]  %s4104_s0, 256, %s28_s30, [#allocation3], %s3395_s16, %s3395_s16, %s3396_s17  }
   0xe   :  { %s3397_s20 = smov [#allocation5]  }
   0xf   :  { %s39_s21 = sshll.u32 %s3397_s20, 4  ;;  %s40_s21 = int_to_ptr.vmem [resolvable:$true] %s39_s21 }
  0x10   :  { %s3356_s22 = scalar_lea.vmem %s40_s21, 256  ;;  %p3361_p6 = scmp.lt.s32.totalorder %s40_s21, %s40_s21 }
  0x11   :  { %p3357_p5 = scmp.ne.s32.totalorder %s40_s21, %s3356_s22  ;;  %p3362_p7 = scmp.lt.s32.totalorder %s3356_s22, %s3356_s22 }
  0x13   :  { %p3363_p8 = por %p3362_p7, %p3361_p6 }
  0x15   :  { %p3364_p9 = pnand %p3363_p8, %p3357_p5 }
  0x17   :  { %3367 = shalt.err (!%p3364_p9)
}
  0x18   :  { %45 = dma.hbm_to_vmem [thread:$0]  %s4105_s1, 256, %s40_s21, [#allocation6], %s3395_s16, %s3395_s16, %s3396_s17  }
  0x19   :  { %3388 = dma.done.wait [#allocation3], 256  }
  0x1a   :  { %3389 = vsyncadd [#allocation3], 4294967040 }
  0x1b   :  { %3390 = dma.done.wait [#allocation6], 256  }
  0x1c   :  { %3391 = vsyncadd [#allocation6], 4294967040  ;;  %vm82_vm0 = vcmask 261120   ;;  %v76_v0 = vld [vmem:[#allocation2] sm:$0xff]  ;;  %v77_v1 = vld [vmem:[#allocation2 + $0x8] sm:$0xff]  ;;  %vm254_vm1 = vcmask 31744  }
  0x1d   :  { %v83_v2 = vsel %vm82_vm0, %v76_v0, 0.0  ;;  %v86_v3 = vsel %vm82_vm0, %v77_v1, 0.0  ;;  %v131_v14 = vld [vmem:[%s4108_s4 + $0x18] sm:$0xff]  ;;  %v130_v15 = vld [vmem:[%s4108_s4 + $0x10] sm:$0xff]  ;;  %v129_v16 = vld [vmem:[%s4108_s4 + $0x8] sm:$0xff]  ;;  %s3401_s22 = smov 116  }
  0x1e   :  { %84 = vadd.xlane.f32.xlu0 %v83_v2  ;;  %3047 = vmatprep.subr.mxu0 %v131_v14  ;;  %v128_v17 = vld [vmem:[%s4108_s4] sm:$0xff]  ;;  %s3402_s23 = smov 104   ;;  %s3403_s24 = smov 108   ;;  %vm983_vm3 = vcmask 130048   ;;  %vm1886_vm5 = vcmask 1043456   ;;  %vm2747_vm6 = vcmask 523264  }
  0x1f   :  { %3048 = vmatpush3.msra.mxu0 %v131_v14  ;;  %v2851_v25 = vld [vmem:[%s4106_s2] ss:$0 sm:$0xff]  ;;  %s3398_s2 = smov 120   ;;  %s3404_s0 = smov 96  }
  0x20   :  { %3049 = vmatprep.subr.mxu0 %v130_v15  ;;  %v2852_v27 = vld [vmem:[%s4107_s3] ss:$0 sm:$0xff]  ;;  %s3399_s3 = smov 124   ;;  %s3405_s1 = smov 100  }
  0x21   :  { %3050 = vmatpush3.msra.mxu0 %v130_v15  ;;  %v2853_v34 = vld [vmem:[%s4109_s5] ss:$0 sm:$0xff]  ;;  %s3400_s5 = smov 112   ;;  %s3406_s25 = smov 64  }
  0x22   :  { %87 = vadd.xlane.f32.xlu0 %v86_v3  ;;  %3051 = vmatprep.subr.mxu0 %v129_v16 }
  0x23   :  { %3052 = vmatpush3.msra.mxu0 %v129_v16 }
  0x24   :  { %3053 = vmatprep.subr.mxu0 %v128_v17 }
  0x25   :  { %3054 = vmatpush3.msra.mxu0 %v128_v17 }
  0xa7   :  { %v85_v4 = vpop.xlane.xlu0 %84 }
  0xa8   :  { %v90_v5 = vmul.f32 0.03125, %v85_v4 }
  0xaa   :  { %v92_v6 = vsub.f32 %v76_v0, %v90_v5 }
  0xab   :  { %v88_v7 = vpop.xlane.xlu0 %87 }
  0xac   :  { %v91_v8 = vmul.f32 0.03125, %v88_v7  ;;  %v94_v9 = vmul.f32 %v92_v6, %v92_v6 }
  0xae   :  { %v93_v10 = vsub.f32 %v77_v1, %v91_v8  ;;  %v96_v11 = vsel %vm82_vm0, %v94_v9, 0.0 }
  0xaf   :  { %97 = vadd.xlane.f32.xlu1 %v96_v11  ;;  %v3665_v11 = vld [vmem:[#allocation5 + $0x8] sm:$0xff] }
  0xb0   :  { %v95_v12 = vmul.f32 %v93_v10, %v93_v10  ;;  %vm81_vm2 = vcmp.gt.f32.partialorder %v3665_v11, 0.0  ;;  %v1875_v11 = vld [vmem:[%s4110_s6 + $0xc] sm:$0xf] }
  0xb2   :  { %v99_v13 = vsel %vm82_vm0, %v95_v12, 0.0  ;;  %v3667_v12 = vld [vmem:[#allocation5] sm:$0xff] }
  0xb3   :  { %100 = vadd.xlane.f32.xlu1 %v99_v13  ;;  %vm80_vm4 = vcmp.gt.f32.partialorder %v3667_v12, 0.0  ;;  %v1874_v12 = vld [vmem:[%s4110_s6 + $0x8] sm:$0xf] }
 0x138   :  { %v98_v18 = vpop.xlane.xlu1 %97 }
 0x139   :  { %v102_v19 = vmul.f32 0.03125, %v98_v18 }
 0x13b   :  { %v104_v20 = vadd.f32 1e-12, %v102_v19 }
 0x13c   :  { %v101_v21 = vpop.xlane.xlu1 %100 }
 0x13d   :  { %3254 = vrsqrt.f32 %v104_v20  ;;  %v103_v22 = vmul.f32 0.03125, %v101_v21 }
 0x13f   :  { %v105_v23 = vadd.f32 1e-12, %v103_v22 }
 0x141   :  { %3256 = vrsqrt.f32 %v105_v23 }
 0x14a   :  { %v3255_v24 = vpop.eup %3254 }
 0x14b   :  { %v108_v26 = vmul.f32 %v3255_v24, %v92_v6 }
 0x14d   :  { %v117_v28 = vmul.f32 %v2851_v25, %v108_v26 }
 0x14e   :  { %v3257_v29 = vpop.eup %3256 }
 0x14f   :  { %v109_v30 = vmul.f32 %v3257_v29, %v93_v10  ;;  %v126_v31 = vadd.f32 %v2852_v27, %v117_v28 }
 0x151   :  { %v118_v32 = vmul.f32 %v2851_v25, %v109_v30  ;;  %3055 = vmatprep.mubr.msk.f32.mxu0 %vm82_vm0, %v126_v31 }
 0x153   :  { %v127_v33 = vadd.f32 %v2852_v27, %v118_v32 }
 0x155   :  { %3056 = vmatmul.mubr.msk.f32.vlgmr.msra.gmra.mxu0 %vm82_vm0, %v127_v33 }
 0x215   :  { %v3057_v35 = vpop.f32.mrf.mxu0 }
 0x216   :  { %v3522_v36 = vadd.f32 %v3057_v35, %v2853_v34 }
 0x217   :  { %v211_v37 = vpop.f32.mrf.mxu0 }
 0x218   :  { %v3524_v38 = vadd.f32 %v2853_v34, %v211_v37  ;;  %228 = vrot.lane.b32.xlu1 %v3522_v36, %s3398_s2  ;;  %224 = vrot.lane.b32.xlu0 %v3522_v36, %s3399_s3 }
 0x21a   :  { %3062 = vmatprep.mubr.msk.f32.mxu1 %vm254_vm1, %v3524_v38 }
 0x21c   :  { %226 = vrot.lane.b32.xlu0 %v3524_v38, %s3398_s2  ;;  %222 = vrot.lane.b32.xlu1 %v3524_v38, %s3399_s3 }
 0x220   :  { %236 = vrot.lane.b32.xlu0 %v3522_v36, %s3400_s5  ;;  %232 = vrot.lane.b32.xlu1 %v3522_v36, %s3401_s22 }
 0x224   :  { %234 = vrot.lane.b32.xlu0 %v3524_v38, %s3400_s5  ;;  %230 = vrot.lane.b32.xlu1 %v3524_v38, %s3401_s22 }
 0x228   :  { %244 = vrot.lane.b32.xlu0 %v3522_v36, %s3402_s23  ;;  %240 = vrot.lane.b32.xlu1 %v3522_v36, %s3403_s24 }
 0x22c   :  { %242 = vrot.lane.b32.xlu0 %v3524_v38, %s3402_s23  ;;  %238 = vrot.lane.b32.xlu1 %v3524_v38, %s3403_s24 }
 0x230   :  { %252 = vrot.lane.b32.xlu0 %v3522_v36, %s3404_s0  ;;  %248 = vrot.lane.b32.xlu1 %v3522_v36, %s3405_s1 }
 0x234   :  { %250 = vrot.lane.b32.xlu0 %v3524_v38, %s3404_s0  ;;  %246 = vrot.lane.b32.xlu1 %v3524_v38, %s3405_s1 }
 0x28a   :  { %v229_v39 = vpop.permute.xlu1 %228  ;;  %v3546_v40 = vpop.permute.xlu0 %224 }
 0x28b   :  { %427 = vrot.lane.b32.xlu0 %v229_v39, %s3404_s0  ;;  %340 = vrot.lane.b32.xlu1 %v3546_v40, %s3404_s0 }
 0x28e   :  { %v227_v41 = vpop.permute.xlu0 %226  ;;  %v223_v42 = vpop.permute.xlu1 %222 }
 0x28f   :  { %425 = vrot.lane.b32.xlu0 %v227_v41, %s3404_s0  ;;  %3069 = vmatprep.mubr.msk.f32.mxu0 %vm254_vm1, %v223_v42 }
 0x290   :  { %338 = vrot.lane.b32.xlu1 %v223_v42, %s3404_s0 }
 0x292   :  { %v3554_v43 = vpop.permute.xlu0 %236  ;;  %v3556_v44 = vpop.permute.xlu1 %232 }
 0x293   :  { %601 = vrot.lane.b32.xlu0 %v3554_v43, %s3404_s0 }
 0x294   :  { %514 = vrot.lane.b32.xlu1 %v3556_v44, %s3404_s0 }
 0x296   :  { %v235_v45 = vpop.permute.xlu0 %234  ;;  %v231_v46 = vpop.permute.xlu1 %230 }
 0x297   :  { %599 = vrot.lane.b32.xlu0 %v235_v45, %s3404_s0 }
 0x298   :  { %512 = vrot.lane.b32.xlu1 %v231_v46, %s3404_s0 }
 0x29a   :  { %v3564_v47 = vpop.permute.xlu0 %244  ;;  %v3566_v48 = vpop.permute.xlu1 %240 }
 0x29b   :  { %775 = vrot.lane.b32.xlu0 %v3564_v47, %s3404_s0 }
 0x29c   :  { %688 = vrot.lane.b32.xlu1 %v3566_v48, %s3404_s0 }
 0x29e   :  { %v3572_v49 = vpop.permute.xlu0 %242  ;;  %v3574_v50 = vpop.permute.xlu1 %238 }
 0x29f   :  { %773 = vrot.lane.b32.xlu0 %v3572_v49, %s3404_s0 }
 0x2a0   :  { %686 = vrot.lane.b32.xlu1 %v3574_v50, %s3404_s0 }
 0x2a2   :  { %v253_v51 = vpop.permute.xlu0 %252  ;;  %v3580_v52 = vpop.permute.xlu1 %248 }
 0x2a3   :  { %1178 = vrot.lane.b32.xlu0 %v3522_v36, %s3406_s25  ;;  %3058 = vmatprep.subr.msk.mxu1 %vm254_vm1, %v253_v51 }
 0x2a4   :  { %862 = vrot.lane.b32.xlu1 %v3580_v52, %s3404_s0  ;;  %3059 = vmatpush3.xpose.msk.msra.mxu1 %vm254_vm1, %v253_v51 }
 0x2a6   :  { %v251_v53 = vpop.permute.xlu0 %250  ;;  %v3588_v54 = vpop.permute.xlu1 %246 }
 0x2a7   :  { %1352 = vrot.lane.b32.xlu0 %v229_v39, %s3406_s25  ;;  %3060 = vmatprep.subr.msk.mxu1 %vm254_vm1, %v251_v53 }
 0x2a8   :  { %860 = vrot.lane.b32.xlu1 %v3588_v54, %s3404_s0  ;;  %3061 = vmatpush3.xpose.msk.msra.mxu1 %vm254_vm1, %v251_v53 }
 0x2ab   :  { %1439 = vrot.lane.b32.xlu0 %v3556_v44, %s3406_s25  ;;  %3063 = vmatmul.mubr.msk.f32.vlgmr.msra.gmra.mxu1 %vm254_vm1, %v3522_v36 }
 0x2ac   :  { %1176 = vrot.lane.b32.xlu1 %v3524_v38, %s3406_s25  ;;  %3076 = vmatprep.mubr.msk.f32.mxu1 %vm254_vm1, %v227_v41 }
 0x2af   :  { %1526 = vrot.lane.b32.xlu0 %v3554_v43, %s3406_s25 }
 0x2b0   :  { %1265 = vrot.lane.b32.xlu1 %v3546_v40, %s3406_s25 }
 0x2b4   :  { %1263 = vrot.lane.b32.xlu1 %v223_v42, %s3406_s25 }
 0x2b8   :  { %1350 = vrot.lane.b32.xlu1 %v227_v41, %s3406_s25 }
 0x2bc   :  { %1437 = vrot.lane.b32.xlu1 %v231_v46, %s3406_s25 }
 0x2c0   :  { %1524 = vrot.lane.b32.xlu1 %v235_v45, %s3406_s25 }
 0x2fd   :  { %v428_v55 = vpop.permute.xlu0 %427  ;;  %v341_v56 = vpop.permute.xlu1 %340 }
 0x2fe   :  { %3065 = vmatprep.subr.msk.mxu0 %vm254_vm1, %v341_v56  ;;  %3072 = vmatprep.subr.msk.mxu1 %vm254_vm1, %v428_v55 }
 0x2ff   :  { %3066 = vmatpush3.xpose.msk.msra.mxu0 %vm254_vm1, %v341_v56  ;;  %3073 = vmatpush3.xpose.msk.msra.mxu1 %vm254_vm1, %v428_v55 }
 0x301   :  { %v426_v57 = vpop.permute.xlu0 %425 }
 0x302   :  { %v339_v58 = vpop.permute.xlu1 %338  ;;  %3074 = vmatprep.subr.msk.mxu1 %vm254_vm1, %v426_v57 }
 0x303   :  { %3067 = vmatprep.subr.msk.mxu0 %vm254_vm1, %v339_v58  ;;  %3075 = vmatpush3.xpose.msk.msra.mxu1 %vm254_vm1, %v426_v57 }
 0x304   :  { %3068 = vmatpush3.xpose.msk.msra.mxu0 %vm254_vm1, %v339_v58 }
 0x305   :  { %v602_v59 = vpop.permute.xlu0 %601 }
 0x306   :  { %v515_v60 = vpop.permute.xlu1 %514  ;;  %3077 = vmatmul.mubr.msk.f32.vlgmr.msra.gmra.mxu1 %vm254_vm1, %v229_v39  ;;  %3086 = vmatprep.subr.msk.mxu1 %vm254_vm1, %v602_v59 }
 0x307   :  { %3070 = vmatmul.mubr.msk.f32.vlgmr.msra.gmra.mxu0 %vm254_vm1, %v3546_v40  ;;  %3079 = vmatprep.subr.msk.mxu0 %vm254_vm1, %v515_v60 }
 0x308   :  { %3080 = vmatpush3.xpose.msk.msra.mxu0 %vm254_vm1, %v515_v60  ;;  %3083 = vmatprep.mubr.msk.f32.mxu0 %vm254_vm1, %v231_v46 }
 0x309   :  { %3087 = vmatpush3.xpose.msk.msra.mxu1 %vm254_vm1, %v602_v59  ;;  %3090 = vmatprep.mubr.msk.f32.mxu1 %vm254_vm1, %v235_v45  ;;  %v600_v61 = vpop.permute.xlu0 %599 }
 0x30a   :  { %v513_v62 = vpop.permute.xlu1 %512  ;;  %3088 = vmatprep.subr.msk.mxu1 %vm254_vm1, %v600_v61 }
 0x30b   :  { %3081 = vmatprep.subr.msk.mxu0 %vm254_vm1, %v513_v62 }
 0x30c   :  { %3082 = vmatpush3.xpose.msk.msra.mxu0 %vm254_vm1, %v513_v62 }
 0x30d   :  { %3089 = vmatpush3.xpose.msk.msra.mxu1 %vm254_vm1, %v600_v61  ;;  %v776_v63 = vpop.permute.xlu0 %775 }
 0x30e   :  { %v689_v0 = vpop.permute.xlu1 %688  ;;  %3100 = vmatprep.subr.msk.mxu1 %vm254_vm1, %v776_v63 }
 0x30f   :  { %3084 = vmatmul.mubr.msk.f32.vlgmr.msra.gmra.mxu0 %vm254_vm1, %v3556_v44  ;;  %3093 = vmatprep.subr.msk.mxu0 %vm254_vm1, %v689_v0 }
 0x310   :  { %3091 = vmatmul.mubr.msk.f32.vlgmr.msra.gmra.mxu1 %vm254_vm1, %v3554_v43  ;;  %3094 = vmatpush3.xpose.msk.msra.mxu0 %vm254_vm1, %v689_v0 }
 0x311   :  { %3097 = vmatprep.mubr.msk.f32.mxu0 %vm254_vm1, %v3574_v50  ;;  %3101 = vmatpush3.xpose.msk.msra.mxu1 %vm254_vm1, %v776_v63  ;;  %v774_v1 = vpop.permute.xlu0 %773 }
 0x312   :  { %3104 = vmatprep.mubr.msk.f32.mxu1 %vm254_vm1, %v3572_v49  ;;  %v687_v2 = vpop.permute.xlu1 %686  ;;  %3102 = vmatprep.subr.msk.mxu1 %vm254_vm1, %v774_v1 }
 0x313   :  { %3095 = vmatprep.subr.msk.mxu0 %vm254_vm1, %v687_v2 }
 0x314   :  { %3096 = vmatpush3.xpose.msk.msra.mxu0 %vm254_vm1, %v687_v2 }
 0x315   :  { %3103 = vmatpush3.xpose.msk.msra.mxu1 %vm254_vm1, %v774_v1  ;;  %v1179_v5 = vpop.permute.xlu0 %1178 }
 0x316   :  { %v863_v3 = vpop.permute.xlu1 %862 }
 0x317   :  { %3098 = vmatmul.mubr.msk.f32.vlgmr.msra.gmra.mxu0 %vm254_vm1, %v3566_v48  ;;  %3107 = vmatprep.subr.msk.mxu0 %vm254_vm1, %v863_v3 }
 0x318   :  { %3105 = vmatmul.mubr.msk.f32.vlgmr.msra.gmra.mxu1 %vm254_vm1, %v3564_v47  ;;  %3108 = vmatpush3.xpose.msk.msra.mxu0 %vm254_vm1, %v863_v3 }
 0x319   :  { %3111 = vmatprep.mubr.msk.f32.mxu0 %vm254_vm1, %v3588_v54  ;;  %v3659_v7 = vpop.permute.xlu0 %1352 }
 0x31a   :  { %v861_v4 = vpop.permute.xlu1 %860 }
 0x31b   :  { %3109 = vmatprep.subr.msk.mxu0 %vm254_vm1, %v861_v4 }
 0x31c   :  { %3110 = vmatpush3.xpose.msk.msra.mxu0 %vm254_vm1, %v861_v4 }
 0x31d   :  { %3114 = vmatprep.subr.mxu0 %v1179_v5  ;;  %v3662_v10 = vpop.permute.xlu0 %1439 }
 0x31e   :  { %v1177_v6 = vpop.permute.xlu1 %1176 }
 0x31f   :  { %3112 = vmatmul.mubr.msk.f32.vlgmr.msra.gmra.mxu0 %vm254_vm1, %v3580_v52 }
 0x320   :  { %3115 = vmatpush3.msra.mxu0 %v1179_v5 }
 0x321   :  { %3116 = vmatprep.subr.mxu0 %v1177_v6 }
 0x322   :  { %3117 = vmatpush3.msra.mxu0 %v1177_v6  ;;  %v1266_v8 = vpop.permute.xlu1 %1265 }
 0x323   :  { %3121 = vmatprep.subr.mxu1 %v1266_v8  ;;  %3128 = vmatprep.subr.mxu0 %v3659_v7 }
 0x324   :  { %3122 = vmatpush3.msra.mxu1 %v1266_v8 }
 0x326   :  { %v1264_v9 = vpop.permute.xlu1 %1263 }
 0x327   :  { %3123 = vmatprep.subr.mxu1 %v1264_v9 }
 0x328   :  { %3124 = vmatpush3.msra.mxu1 %v1264_v9 }
 0x329   :  { %3135 = vmatprep.subr.mxu1 %v3662_v10 }
 0x36b   :  { %v3064_v13 = vpop.f32.mrf.mxu1 }
 0x36c   :  { %v948_v14 = vmul.f32 0.5, %v3064_v13 }
 0x36d   :  { %v329_v15 = vpop.f32.mrf.mxu1 }
 0x36e   :  { %v947_v16 = vmul.f32 0.5, %v329_v15  ;;  %v3673_v17 = vsel %vm81_vm2, %v948_v14, -3.4028235e+38 }
 0x36f   :  { %v987_v18 = vsel %vm983_vm3, %v3673_v17, -inf }
 0x370   :  { %988 = vmax.xlane.f32.xlu1 %v987_v18  ;;  %v3679_v19 = vsel %vm80_vm4, %v947_v16, -3.4028235e+38 }
 0x371   :  { %v984_v20 = vsel %vm983_vm3, %v3679_v19, -inf }
 0x372   :  { %985 = vmax.xlane.f32.xlu0 %v984_v20 }
 0x3c6   :  { %v3078_v21 = vpop.f32.mrf.mxu1 }
 0x3c7   :  { %v3071_v22 = vpop.f32.mrf.mxu0  ;;  %v952_v23 = vmul.f32 0.5, %v3078_v21 }
 0x3c8   :  { %v950_v24 = vmul.f32 0.5, %v3071_v22  ;;  %v503_v26 = vpop.f32.mrf.mxu1 }
 0x3c9   :  { %v416_v25 = vpop.f32.mrf.mxu0  ;;  %v3685_v27 = vsel %vm81_vm2, %v952_v23, -3.4028235e+38  ;;  %v951_v32 = vmul.f32 0.5, %v503_v26 }
 0x3ca   :  { %v949_v28 = vmul.f32 0.5, %v416_v25  ;;  %v3689_v29 = vsel %vm81_vm2, %v950_v24, -3.4028235e+38  ;;  %v999_v30 = vsel %vm983_vm3, %v3685_v27, -inf  ;;  %v3767_v25 = vpop.permute.xlu1 %1350 }
 0x3cb   :  { %v993_v31 = vsel %vm983_vm3, %v3689_v29, -inf  ;;  %1000 = vmax.xlane.f32.xlu1 %v999_v30  ;;  %v3703_v38 = vsel %vm80_vm4, %v951_v32, -3.4028235e+38  ;;  %v3779_v30 = vpop.permute.xlu0 %1526 }
 0x3cc   :  { %994 = vmax.xlane.f32.xlu0 %v993_v31  ;;  %v3697_v33 = vsel %vm80_vm4, %v949_v28, -3.4028235e+38  ;;  %v996_v45 = vsel %vm983_vm3, %v3703_v38, -inf }
 0x3cd   :  { %v990_v35 = vsel %vm983_vm3, %v3697_v33, -inf }
 0x3ce   :  { %v3771_v26 = vpop.permute.xlu1 %1437 }
 0x3cf   :  { %v3085_v34 = vpop.f32.mrf.mxu0 }
 0x3d0   :  { %v954_v36 = vmul.f32 0.5, %v3085_v34  ;;  %v3092_v37 = vpop.f32.mrf.mxu1  ;;  %991 = vmax.xlane.f32.xlu0 %v990_v35 }
 0x3d1   :  { %v956_v39 = vmul.f32 0.5, %v3092_v37  ;;  %v590_v40 = vpop.f32.mrf.mxu0 }
 0x3d2   :  { %v953_v41 = vmul.f32 0.5, %v590_v40  ;;  %v677_v42 = vpop.f32.mrf.mxu1  ;;  %v3707_v43 = vsel %vm81_vm2, %v954_v36, -3.4028235e+38  ;;  %v3775_v28 = vpop.permute.xlu1 %1524 }
 0x3d3   :  { %v1005_v44 = vsel %vm983_vm3, %v3707_v43, -inf  ;;  %v955_v46 = vmul.f32 0.5, %v677_v42  ;;  %v3719_v53 = vsel %vm81_vm2, %v956_v39, -3.4028235e+38 }
 0x3d4   :  { %1006 = vmax.xlane.f32.xlu1 %v1005_v44  ;;  %997 = vmax.xlane.f32.xlu0 %v996_v45  ;;  %v3715_v51 = vsel %vm80_vm4, %v953_v41, -3.4028235e+38  ;;  %v1011_v57 = vsel %vm983_vm3, %v3719_v53, -inf }
 0x3d5   :  { %v1002_v56 = vsel %vm983_vm3, %v3715_v51, -inf  ;;  %v3727_v60 = vsel %vm80_vm4, %v955_v46, -3.4028235e+38 }
 0x3d6   :  { %v1008_v3 = vsel %vm983_vm3, %v3727_v60, -inf }
 0x3d7   :  { %v3099_v55 = vpop.f32.mrf.mxu0 }
 0x3d8   :  { %v958_v58 = vmul.f32 0.5, %v3099_v55  ;;  %v3106_v59 = vpop.f32.mrf.mxu1  ;;  %1003 = vmax.xlane.f32.xlu0 %v1002_v56  ;;  %1012 = vmax.xlane.f32.xlu1 %v1011_v57 }
 0x3d9   :  { %v960_v61 = vmul.f32 0.5, %v3106_v59  ;;  %v764_v62 = vpop.f32.mrf.mxu0 }
 0x3da   :  { %v957_v63 = vmul.f32 0.5, %v764_v62  ;;  %v851_v0 = vpop.f32.mrf.mxu1  ;;  %v3731_v1 = vsel %vm81_vm2, %v958_v58, -3.4028235e+38 }
 0x3db   :  { %v1017_v2 = vsel %vm983_vm3, %v3731_v1, -inf  ;;  %v959_v4 = vmul.f32 0.5, %v851_v0  ;;  %v3743_v6 = vsel %vm81_vm2, %v960_v61, -3.4028235e+38 }
 0x3dc   :  { %1018 = vmax.xlane.f32.xlu1 %v1017_v2  ;;  %1009 = vmax.xlane.f32.xlu0 %v1008_v3  ;;  %v3739_v5 = vsel %vm80_vm4, %v957_v63, -3.4028235e+38  ;;  %v1023_v13 = vsel %vm983_vm3, %v3743_v6, -inf }
 0x3dd   :  { %v1014_v9 = vsel %vm983_vm3, %v3739_v5, -inf  ;;  %v3751_v15 = vsel %vm80_vm4, %v959_v4, -3.4028235e+38 }
 0x3de   :  { %v1020_v22 = vsel %vm983_vm3, %v3751_v15, -inf }
 0x3df   :  { %v3113_v8 = vpop.f32.mrf.mxu0 }
 0x3e0   :  { %v962_v14 = vmul.f32 0.5, %v3113_v8  ;;  %1015 = vmax.xlane.f32.xlu0 %v1014_v9  ;;  %1024 = vmax.xlane.f32.xlu1 %v1023_v13 }
 0x3e1   :  { %v938_v16 = vpop.f32.mrf.mxu0 }
 0x3e2   :  { %v961_v18 = vmul.f32 0.5, %v938_v16  ;;  %v3755_v20 = vsel %vm81_vm2, %v962_v14, -3.4028235e+38 }
 0x3e3   :  { %v1029_v21 = vsel %vm983_vm3, %v3755_v20, -inf }
 0x3e4   :  { %1030 = vmax.xlane.f32.xlu1 %v1029_v21  ;;  %1021 = vmax.xlane.f32.xlu0 %v1020_v22  ;;  %v3763_v23 = vsel %vm80_vm4, %v961_v18, -3.4028235e+38 }
 0x3e5   :  { %v1026_v24 = vsel %vm983_vm3, %v3763_v23, -inf }
 0x3e8   :  { %1027 = vmax.xlane.f32.xlu0 %v1026_v24 }
 0x3f5   :  { %1611 = vrot.lane.b32.xlu1 %v3574_v50, %s3406_s25 }
 0x3f9   :  { %1698 = vrot.lane.b32.xlu1 %v3572_v49, %s3406_s25  ;;  %v989_v31 = vpop.xlane.xlu1 %988 }
 0x3fa   :  { %v1033_v32 = vsub.f32 %v3673_v17, %v989_v31 }
 0x3fb   :  { %v986_v34 = vpop.xlane.xlu0 %985 }
 0x3fc   :  { %v1050_v50 = vmul.f32 1.442695, %v1033_v32  ;;  %v1032_v35 = vsub.f32 %v3679_v19, %v986_v34 }
 0x3fe   :  { %1613 = vrot.lane.b32.xlu0 %v3566_v48, %s3406_s25  ;;  %3258 = vpow2.f32 %v1050_v50  ;;  %v1048_v36 = vmul.f32 1.442695, %v1032_v35 }
 0x400   :  { %3260 = vpow2.f32 %v1048_v36 }
 0x402   :  { %1700 = vrot.lane.b32.xlu0 %v3564_v47, %s3406_s25 }
 0x40b   :  { %v3785_v49 = vpop.eup %3258 }
 0x40c   :  { %v1083_v48 = vsel %vm983_vm3, %v3785_v49, 0.0 }
 0x40d   :  { %v3789_v37 = vpop.eup %3260 }
 0x40e   :  { %v1080_v47 = vsel %vm983_vm3, %v3789_v37, 0.0 }
 0x41d   :  { %1084 = vadd.xlane.f32.xlu1 %v1083_v48 }
 0x421   :  { %1081 = vadd.xlane.f32.xlu0 %v1080_v47 }
 0x454   :  { %v1001_v17 = vpop.xlane.xlu1 %1000 }
 0x455   :  { %v995_v39 = vpop.xlane.xlu0 %994  ;;  %v1037_v40 = vsub.f32 %v3685_v27, %v1001_v17 }
 0x456   :  { %v1035_v19 = vsub.f32 %v3689_v29, %v995_v39 }
 0x457   :  { %v1058_v42 = vmul.f32 1.442695, %v1037_v40 }
 0x458   :  { %v1054_v41 = vmul.f32 1.442695, %v1035_v19 }
 0x459   :  { %v992_v44 = vpop.xlane.xlu0 %991 }
 0x45a   :  { %3262 = vpow2.f32 %v1054_v41  ;;  %v1034_v45 = vsub.f32 %v3697_v33, %v992_v44 }
 0x45b   :  { %3264 = vpow2.f32 %v1058_v42 }
 0x45c   :  { %v1052_v46 = vmul.f32 1.442695, %v1034_v45 }
 0x45d   :  { %v1007_v55 = vpop.xlane.xlu1 %1006  ;;  %v998_v56 = vpop.xlane.xlu0 %997 }
 0x45e   :  { %3266 = vpow2.f32 %v1052_v46  ;;  %v1039_v57 = vsub.f32 %v3707_v43, %v1007_v55  ;;  %v1036_v58 = vsub.f32 %v3703_v38, %v998_v56 }
 0x460   :  { %v1062_v59 = vmul.f32 1.442695, %v1039_v57  ;;  %v1056_v61 = vmul.f32 1.442695, %v1036_v58 }
 0x461   :  { %v1004_v27 = vpop.xlane.xlu0 %1003  ;;  %v1013_v62 = vpop.xlane.xlu1 %1012 }
 0x462   :  { %3268 = vpow2.f32 %v1062_v59  ;;  %v1038_v29 = vsub.f32 %v3715_v51, %v1004_v27  ;;  %v1041_v63 = vsub.f32 %v3719_v53, %v1013_v62 }
 0x463   :  { %3270 = vpow2.f32 %v1056_v61 }
 0x464   :  { %v1060_v33 = vmul.f32 1.442695, %v1038_v29  ;;  %v1066_v0 = vmul.f32 1.442695, %v1041_v63 }
 0x465   :  { %v1019_v2 = vpop.xlane.xlu1 %1018  ;;  %v1010_v3 = vpop.xlane.xlu0 %1009 }
 0x466   :  { %3272 = vpow2.f32 %v1060_v33  ;;  %v1043_v4 = vsub.f32 %v3731_v1, %v1019_v2  ;;  %v1040_v43 = vsub.f32 %v3727_v60, %v1010_v3 }
 0x467   :  { %v3802_v38 = vpop.eup %3262  ;;  %3274 = vpow2.f32 %v1066_v0 }
 0x468   :  { %v1070_v8 = vmul.f32 1.442695, %v1043_v4  ;;  %v1064_v9 = vmul.f32 1.442695, %v1040_v43  ;;  %v1089_v51 = vsel %vm983_vm3, %v3802_v38, 0.0  ;;  %v3806_v13 = vpop.eup %3264 }
 0x469   :  { %v1016_v53 = vpop.xlane.xlu0 %1015  ;;  %1090 = vadd.xlane.f32.xlu1 %v1089_v51  ;;  %v1025_v14 = vpop.xlane.xlu1 %1024  ;;  %v1095_v22 = vsel %vm983_vm3, %v3806_v13, 0.0 }
 0x46a   :  { %3276 = vpow2.f32 %v1070_v8  ;;  %v1042_v16 = vsub.f32 %v3739_v5, %v1016_v53  ;;  %v1045_v1 = vsub.f32 %v3743_v6, %v1025_v14 }
 0x46b   :  { %v3810_v18 = vpop.eup %3266  ;;  %3278 = vpow2.f32 %v1064_v9 }
 0x46c   :  { %v1068_v60 = vmul.f32 1.442695, %v1042_v16  ;;  %v1074_v21 = vmul.f32 1.442695, %v1045_v1  ;;  %v1086_v24 = vsel %vm983_vm3, %v3810_v18, 0.0 }
 0x46d   :  { %1096 = vadd.xlane.f32.xlu1 %v1095_v22  ;;  %v1031_v31 = vpop.xlane.xlu1 %1030  ;;  %1087 = vadd.xlane.f32.xlu0 %v1086_v24  ;;  %v1022_v32 = vpop.xlane.xlu0 %1021 }
 0x46e   :  { %3280 = vpow2.f32 %v1068_v60  ;;  %v1047_v5 = vsub.f32 %v3755_v20, %v1031_v31  ;;  %v1044_v6 = vsub.f32 %v3751_v15, %v1022_v32 }
 0x46f   :  { %v3818_v34 = vpop.eup %3268  ;;  %3282 = vpow2.f32 %v1074_v21 }
 0x470   :  { %v3820_v50 = vpop.eup %3270  ;;  %v1078_v35 = vmul.f32 1.442695, %v1047_v5  ;;  %v1072_v36 = vmul.f32 1.442695, %v1044_v6  ;;  %v1101_v48 = vsel %vm983_vm3, %v3818_v34, 0.0 }
 0x471   :  { %1102 = vadd.xlane.f32.xlu1 %v1101_v48  ;;  %v1092_v47 = vsel %vm983_vm3, %v3820_v50, 0.0  ;;  %v1028_v17 = vpop.xlane.xlu0 %1027  ;;  %v3865_v63 = vpop.permute.xlu1 %1611 }
 0x472   :  { %3284 = vpow2.f32 %v1078_v35  ;;  %1093 = vadd.xlane.f32.xlu0 %v1092_v47  ;;  %v1046_v20 = vsub.f32 %v3763_v23, %v1028_v17 }
 0x473   :  { %v3827_v15 = vpop.eup %3272  ;;  %3286 = vpow2.f32 %v1072_v36 }
 0x474   :  { %v3829_v39 = vpop.eup %3274  ;;  %v1076_v40 = vmul.f32 1.442695, %v1046_v20  ;;  %v1098_v19 = vsel %vm983_vm3, %v3827_v15, 0.0 }
 0x475   :  { %v1107_v41 = vsel %vm983_vm3, %v3829_v39, 0.0  ;;  %v3869_v33 = vpop.permute.xlu0 %1613  ;;  %v3871_v0 = vpop.permute.xlu1 %1698 }
 0x476   :  { %3288 = vpow2.f32 %v1076_v40  ;;  %1108 = vadd.xlane.f32.xlu1 %v1107_v41  ;;  %1099 = vadd.xlane.f32.xlu0 %v1098_v19 }
 0x477   :  { %v3835_v42 = vpop.eup %3276 }
 0x478   :  { %v3837_v44 = vpop.eup %3278  ;;  %v1113_v23 = vsel %vm983_vm3, %v3835_v42, 0.0 }
 0x479   :  { %v1104_v45 = vsel %vm983_vm3, %v3837_v44, 0.0  ;;  %v3873_v2 = vpop.permute.xlu0 %1700 }
 0x47a   :  { %1114 = vadd.xlane.f32.xlu1 %v1113_v23  ;;  %1105 = vadd.xlane.f32.xlu0 %v1104_v45 }
 0x47b   :  { %v3843_v46 = vpop.eup %3280 }
 0x47c   :  { %v3845_v55 = vpop.eup %3282  ;;  %v1110_v56 = vsel %vm983_vm3, %v3843_v46, 0.0 }
 0x47d   :  { %v1119_v57 = vsel %vm983_vm3, %v3845_v55, 0.0 }
 0x47e   :  { %1120 = vadd.xlane.f32.xlu1 %v1119_v57  ;;  %1111 = vadd.xlane.f32.xlu0 %v1110_v56 }
 0x47f   :  { %v3851_v58 = vpop.eup %3284 }
 0x480   :  { %v3853_v59 = vpop.eup %3286  ;;  %v1125_v61 = vsel %vm983_vm3, %v3851_v58, 0.0 }
 0x481   :  { %v1116_v27 = vsel %vm983_vm3, %v3853_v59, 0.0 }
 0x482   :  { %1126 = vadd.xlane.f32.xlu1 %v1125_v61  ;;  %1117 = vadd.xlane.f32.xlu0 %v1116_v27 }
 0x483   :  { %v3859_v62 = vpop.eup %3288 }
 0x484   :  { %v1122_v29 = vsel %vm983_vm3, %v3859_v62, 0.0 }
 0x486   :  { %1123 = vadd.xlane.f32.xlu0 %v1122_v29 }
 0x493   :  { %1785 = vrot.lane.b32.xlu1 %v3588_v54, %s3406_s25 }
 0x49c   :  { %1787 = vrot.lane.b32.xlu0 %v3580_v52, %s3406_s25 }
 0x4a6   :  { %v1085_v3 = vpop.xlane.xlu1 %1084 }
 0x4a7   :  { %3290 = vrcp.f32 %v1085_v3 }
 0x4aa   :  { %v1082_v4 = vpop.xlane.xlu0 %1081 }
 0x4ab   :  { %3292 = vrcp.f32 %v1082_v4 }
 0x4b4   :  { %v3291_v43 = vpop.eup %3290 }
 0x4b5   :  { %v1145_v9 = vmul.f32 %v3291_v43, %v3785_v49 }
 0x4b7   :  { %v1161_v52 = vsel %vm81_vm2, %v1145_v9, 0.0 }
 0x4b8   :  { %v3293_v8 = vpop.eup %3292 }
 0x4b9   :  { %v1144_v54 = vmul.f32 %v3293_v8, %v3789_v37 }
 0x4bb   :  { %v1160_v51 = vsel %vm80_vm4, %v1144_v54, 0.0 }
 0x4bc   :  { %3118 = vmatprep.mubr.msk.f32.mxu0 %vm983_vm3, %v1160_v51  ;;  %v1873_v51 = vld [vmem:[%s4110_s6 + $0x4] sm:$0xf] }
 0x4bd   :  { %3119 = vmatmul.mubr.msk.f32.vlgmr.msra.gmra.mxu0 %vm983_vm3, %v1161_v52 }
 0x4be   :  { %3129 = vmatpush3.msra.mxu0 %v3659_v7 }
 0x4bf   :  { %3130 = vmatprep.subr.mxu0 %v3767_v25 }
 0x4c0   :  { %3131 = vmatpush3.msra.mxu0 %v3767_v25 }
 0x4c1   :  { %3142 = vmatprep.subr.mxu0 %v3779_v30 }
 0x4f2   :  { %v1091_v49 = vpop.xlane.xlu1 %1090 }
 0x4f3   :  { %3294 = vrcp.f32 %v1091_v49  ;;  %v1876_v49 = vld [vmem:[%s4110_s6 + $0x10] sm:$0xf] }
 0x4f6   :  { %v1097_v37 = vpop.xlane.xlu1 %1096  ;;  %v1088_v53 = vpop.xlane.xlu0 %1087 }
 0x4f7   :  { %3296 = vrcp.f32 %v1088_v53 }
 0x4f8   :  { %3298 = vrcp.f32 %v1097_v37 }
 0x4fa   :  { %v1103_v14 = vpop.xlane.xlu1 %1102 }
 0x4fb   :  { %v1094_v16 = vpop.xlane.xlu0 %1093 }
 0x4fc   :  { %3300 = vrcp.f32 %v1094_v16 }
 0x4fd   :  { %3302 = vrcp.f32 %v1103_v14  ;;  %v1877_v14 = vld [vmem:[%s4110_s6 + $0x14] sm:$0xf] }
 0x4ff   :  { %v1109_v1 = vpop.xlane.xlu1 %1108  ;;  %v1100_v60 = vpop.xlane.xlu0 %1099 }
 0x500   :  { %3304 = vrcp.f32 %v1100_v60  ;;  %v3295_v7 = vpop.eup %3294  ;;  %v1878_v60 = vld [vmem:[%s4110_s6 + $0x18] sm:$0xf] }
 0x501   :  { %3306 = vrcp.f32 %v1109_v1  ;;  %v1147_v24 = vmul.f32 %v3295_v7, %v3802_v38 }
 0x503   :  { %v1115_v21 = vpop.xlane.xlu1 %1114  ;;  %v1106_v22 = vpop.xlane.xlu0 %1105  ;;  %v1163_v48 = vsel %vm81_vm2, %v1147_v24, 0.0 }
 0x504   :  { %v3297_v25 = vpop.eup %3296  ;;  %3308 = vrcp.f32 %v1106_v22  ;;  %v1879_v22 = vld [vmem:[%s4110_s6 + $0x1c] sm:$0xf] }
 0x505   :  { %v3299_v31 = vpop.eup %3298  ;;  %3310 = vrcp.f32 %v1115_v21  ;;  %v1146_v32 = vmul.f32 %v3297_v25, %v3810_v18 }
 0x506   :  { %v1149_v47 = vmul.f32 %v3299_v31, %v3806_v13 }
 0x507   :  { %v1121_v5 = vpop.xlane.xlu1 %1120  ;;  %v1112_v6 = vpop.xlane.xlu0 %1111  ;;  %v1162_v35 = vsel %vm80_vm4, %v1146_v32, 0.0 }
 0x508   :  { %3312 = vrcp.f32 %v1112_v6  ;;  %3125 = vmatprep.mubr.msk.f32.mxu1 %vm983_vm3, %v1162_v35  ;;  %v1165_v13 = vsel %vm81_vm2, %v1149_v47, 0.0 }
 0x509   :  { %v3301_v36 = vpop.eup %3300  ;;  %3314 = vrcp.f32 %v1121_v5  ;;  %3126 = vmatmul.mubr.msk.f32.vlgmr.msra.gmra.mxu1 %vm983_vm3, %v1163_v48 }
 0x50a   :  { %v1148_v38 = vmul.f32 %v3301_v36, %v3820_v50  ;;  %v3303_v18 = vpop.eup %3302  ;;  %3136 = vmatpush3.msra.mxu1 %v3662_v10 }
 0x50b   :  { %v1127_v17 = vpop.xlane.xlu1 %1126  ;;  %v1118_v20 = vpop.xlane.xlu0 %1117  ;;  %3137 = vmatprep.subr.mxu1 %v3771_v26  ;;  %v1151_v10 = vmul.f32 %v3303_v18, %v3818_v34 }
 0x50c   :  { %3316 = vrcp.f32 %v1127_v17  ;;  %v1164_v40 = vsel %vm80_vm4, %v1148_v38, 0.0  ;;  %3138 = vmatpush3.msra.mxu1 %v3771_v26 }
 0x50d   :  { %3318 = vrcp.f32 %v1118_v20  ;;  %3132 = vmatprep.mubr.msk.f32.mxu0 %vm983_vm3, %v1164_v40  ;;  %v3305_v50 = vpop.eup %3304  ;;  %3149 = vmatprep.subr.mxu1 %v3869_v33  ;;  %v1167_v34 = vsel %vm81_vm2, %v1151_v10, 0.0 }
 0x50e   :  { %3133 = vmatmul.mubr.msk.f32.vlgmr.msra.gmra.mxu0 %vm983_vm3, %v1165_v13  ;;  %v3307_v19 = vpop.eup %3306  ;;  %v1150_v23 = vmul.f32 %v3305_v50, %v3827_v15 }
 0x50f   :  { %3143 = vmatpush3.msra.mxu0 %v3779_v30  ;;  %v1124_v41 = vpop.xlane.xlu0 %1123  ;;  %v1153_v30 = vmul.f32 %v3307_v19, %v3829_v39  ;;  %v1786_v43 = vpop.permute.xlu1 %1785 }
 0x510   :  { %3144 = vmatprep.subr.mxu0 %v3775_v28  ;;  %3320 = vrcp.f32 %v1124_v41  ;;  %v1166_v26 = vsel %vm80_vm4, %v1150_v23, 0.0 }
 0x511   :  { %3145 = vmatpush3.msra.mxu0 %v3775_v28  ;;  %v3309_v45 = vpop.eup %3308  ;;  %3139 = vmatprep.mubr.msk.f32.mxu1 %vm983_vm3, %v1166_v26  ;;  %v1169_v39 = vsel %vm81_vm2, %v1153_v30, 0.0 }
 0x512   :  { %3156 = vmatprep.subr.mxu0 %v3873_v2  ;;  %v3311_v56 = vpop.eup %3310  ;;  %3140 = vmatmul.mubr.msk.f32.vlgmr.msra.gmra.mxu1 %vm983_vm3, %v1167_v34  ;;  %v1152_v15 = vmul.f32 %v3309_v45, %v3837_v44 }
 0x513   :  { %3150 = vmatpush3.msra.mxu1 %v3869_v33  ;;  %v1788_v28 = vpop.permute.xlu0 %1787  ;;  %v1155_v27 = vmul.f32 %v3311_v56, %v3835_v42  ;;  %v1872_v33 = vld [vmem:[%s4110_s6] sm:$0xf] }
 0x514   :  { %3151 = vmatprep.subr.mxu1 %v3865_v63  ;;  %v1168_v57 = vsel %vm80_vm4, %v1152_v15, 0.0 }
 0x515   :  { %v3313_v61 = vpop.eup %3312  ;;  %3152 = vmatpush3.msra.mxu1 %v3865_v63  ;;  %3146 = vmatprep.mubr.msk.f32.mxu0 %vm983_vm3, %v1168_v57 }
 0x516   :  { %v3315_v29 = vpop.eup %3314  ;;  %3163 = vmatprep.subr.mxu1 %v1788_v28  ;;  %3147 = vmatmul.mubr.msk.f32.vlgmr.msra.gmra.mxu0 %vm983_vm3, %v1169_v39  ;;  %v1154_v44 = vmul.f32 %v3313_v61, %v3843_v46  ;;  %v1171_v46 = vsel %vm81_vm2, %v1155_v27, 0.0 }
 0x517   :  { %3157 = vmatpush3.msra.mxu0 %v3873_v2  ;;  %v1157_v2 = vmul.f32 %v3315_v29, %v3845_v55 }
 0x518   :  { %3158 = vmatprep.subr.mxu0 %v3871_v0  ;;  %v1170_v3 = vsel %vm80_vm4, %v1154_v44, 0.0 }
 0x519   :  { %v3317_v63 = vpop.eup %3316  ;;  %3159 = vmatpush3.msra.mxu0 %v3871_v0  ;;  %3153 = vmatprep.mubr.msk.f32.mxu1 %vm983_vm3, %v1170_v3  ;;  %v1173_v55 = vsel %vm81_vm2, %v1157_v2, 0.0 }
 0x51a   :  { %v3319_v42 = vpop.eup %3318  ;;  %3154 = vmatmul.mubr.msk.f32.vlgmr.msra.gmra.mxu1 %vm983_vm3, %v1171_v46  ;;  %3170 = vmatprep.subr.msk.mxu0 %vm1886_vm5, %v1872_v33  ;;  %v1159_v9 = vmul.f32 %v3317_v63, %v3851_v58 }
 0x51b   :  { %v1156_v4 = vmul.f32 %v3319_v42, %v3853_v59  ;;  %3164 = vmatpush3.msra.mxu1 %v1788_v28 }
 0x51c   :  { %3165 = vmatprep.subr.mxu1 %v1786_v43  ;;  %v1175_v58 = vsel %vm81_vm2, %v1159_v9, 0.0 }
 0x51d   :  { %v3321_v8 = vpop.eup %3320  ;;  %v1172_v0 = vsel %vm80_vm4, %v1156_v4, 0.0  ;;  %3166 = vmatpush3.msra.mxu1 %v1786_v43 }
 0x51e   :  { %3160 = vmatprep.mubr.msk.f32.mxu0 %vm983_vm3, %v1172_v0  ;;  %v1158_v54 = vmul.f32 %v3321_v8, %v3859_v62  ;;  %3175 = vmatprep.subr.msk.mxu1 %vm1886_vm5, %v1873_v51 }
 0x51f   :  { %3161 = vmatmul.mubr.msk.f32.vlgmr.msra.gmra.mxu0 %vm983_vm3, %v1173_v55 }
 0x520   :  { %v1174_v59 = vsel %vm80_vm4, %v1158_v54, 0.0  ;;  %3171 = vmatpush3.msk.msra.mxu0 %vm1886_vm5, %v1872_v33 }
 0x521   :  { %3167 = vmatprep.mubr.msk.f32.mxu1 %vm983_vm3, %v1174_v59  ;;  %3180 = vmatprep.subr.msk.mxu0 %vm1886_vm5, %v1874_v12 }
 0x522   :  { %3168 = vmatmul.mubr.msk.f32.vlgmr.msra.gmra.mxu1 %vm983_vm3, %v1175_v58 }
 0x523   :  { %3176 = vmatpush3.msk.msra.mxu1 %vm1886_vm5, %v1873_v51  ;;  %v2928_v51 = vld [vmem:[%s4111_s7] ss:$0 sm:$0xff] }
 0x524   :  { %3185 = vmatprep.subr.msk.mxu1 %vm1886_vm5, %v1875_v11 }
 0x57d   :  { %v3120_v62 = vpop.f32.mrf.mxu0 }
 0x57f   :  { %v1254_v52 = vpop.f32.mrf.mxu0 }
 0x580   :  { %3172 = vmatprep.mubr.msk.f32.mxu0 %vm254_vm1, %v1254_v52 }
 0x581   :  { %3173 = vmatmul.mubr.msk.f32.vlgmr.msra.gmra.mxu0 %vm254_vm1, %v3120_v62 }
 0x582   :  { %3181 = vmatpush3.msk.msra.mxu0 %vm1886_vm5, %v1874_v12 }
 0x583   :  { %3190 = vmatprep.subr.msk.mxu0 %vm1886_vm5, %v1876_v49 }
 0x5c9   :  { %v3127_v37 = vpop.f32.mrf.mxu1 }
 0x5cb   :  { %v1341_v53 = vpop.f32.mrf.mxu1 }
 0x5cc   :  { %3177 = vmatprep.mubr.msk.f32.mxu1 %vm254_vm1, %v1341_v53 }
 0x5cd   :  { %3178 = vmatmul.mubr.msk.f32.vlgmr.msra.gmra.mxu1 %vm254_vm1, %v3127_v37 }
 0x5ce   :  { %v3134_v16 = vpop.f32.mrf.mxu0  ;;  %3186 = vmatpush3.msk.msra.mxu1 %vm1886_vm5, %v1875_v11 }
 0x5cf   :  { %3195 = vmatprep.subr.msk.mxu1 %vm1886_vm5, %v1877_v14 }
 0x5d0   :  { %v1428_v1 = vpop.f32.mrf.mxu0 }
 0x5d1   :  { %3182 = vmatprep.mubr.msk.f32.mxu0 %vm254_vm1, %v1428_v1 }
 0x5d2   :  { %3183 = vmatmul.mubr.msk.f32.vlgmr.msra.gmra.mxu0 %vm254_vm1, %v3134_v16  ;;  %v3141_v7 = vpop.f32.mrf.mxu1 }
 0x5d3   :  { %3191 = vmatpush3.msk.msra.mxu0 %vm1886_vm5, %v1876_v49 }
 0x5d4   :  { %3200 = vmatprep.subr.msk.mxu0 %vm1886_vm5, %v1878_v60  ;;  %v1515_v21 = vpop.f32.mrf.mxu1 }
 0x5d5   :  { %3187 = vmatprep.mubr.msk.f32.mxu1 %vm254_vm1, %v1515_v21 }
 0x5d6   :  { %v3148_v25 = vpop.f32.mrf.mxu0  ;;  %3188 = vmatmul.mubr.msk.f32.vlgmr.msra.gmra.mxu1 %vm254_vm1, %v3141_v7 }
 0x5d7   :  { %3196 = vmatpush3.msk.msra.mxu1 %vm1886_vm5, %v1877_v14  ;;  %v3326_v14 = vld [vmem:[#allocation2 + $0x8] sm:$0xff] }
 0x5d8   :  { %v1602_v24 = vpop.f32.mrf.mxu0  ;;  %3205 = vmatprep.subr.msk.mxu1 %vm1886_vm5, %v1879_v22 }
 0x5d9   :  { %3192 = vmatprep.mubr.msk.f32.mxu0 %vm254_vm1, %v1602_v24 }
 0x5da   :  { %v3155_v31 = vpop.f32.mrf.mxu1  ;;  %3193 = vmatmul.mubr.msk.f32.vlgmr.msra.gmra.mxu0 %vm254_vm1, %v3148_v25 }
 0x5db   :  { %3201 = vmatpush3.msk.msra.mxu0 %vm1886_vm5, %v1878_v60  ;;  %v3327_v60 = vld [vmem:[#allocation2] sm:$0xff] }
 0x5dc   :  { %v1689_v32 = vpop.f32.mrf.mxu1 }
 0x5dd   :  { %3197 = vmatprep.mubr.msk.f32.mxu1 %vm254_vm1, %v1689_v32 }
 0x5de   :  { %3198 = vmatmul.mubr.msk.f32.vlgmr.msra.gmra.mxu1 %vm254_vm1, %v3155_v31 }
 0x5df   :  { %v3162_v5 = vpop.f32.mrf.mxu0  ;;  %3206 = vmatpush3.msk.msra.mxu1 %vm1886_vm5, %v1879_v22 }
 0x5e1   :  { %v1776_v6 = vpop.f32.mrf.mxu0 }
 0x5e2   :  { %3202 = vmatprep.mubr.msk.f32.mxu0 %vm254_vm1, %v1776_v6  ;;  %v3169_v35 = vpop.f32.mrf.mxu1 }
 0x5e3   :  { %3203 = vmatmul.mubr.msk.f32.vlgmr.msra.gmra.mxu0 %vm254_vm1, %v3162_v5 }
 0x5e4   :  { %v1863_v36 = vpop.f32.mrf.mxu1 }
 0x5e5   :  { %3207 = vmatprep.mubr.msk.f32.mxu1 %vm254_vm1, %v1863_v36 }
 0x5e6   :  { %3208 = vmatmul.mubr.msk.f32.vlgmr.msra.gmra.mxu1 %vm254_vm1, %v3169_v35 }
 0x641   :  { %v3174_v48 = vpop.f32.mrf.mxu0 }
 0x642   :  { %v2568_v50 = vsel %vm82_vm0, %v3174_v48, 0.0 }
 0x643   :  { %v1956_v38 = vpop.f32.mrf.mxu0 }
 0x644   :  { %v2553_v45 = vsel %vm82_vm0, %v1956_v38, 0.0  ;;  %v2640_v38 = vld [vmem:[%s4114_s10 + $0x10] sm:$0xff] }
 0x68d   :  { %v3179_v47 = vpop.f32.mrf.mxu1 }
 0x68e   :  { %v2569_v40 = vsel %vm82_vm0, %v3179_v47, 0.0  ;;  %v2641_v47 = vld [vmem:[%s4114_s10 + $0x18] sm:$0xff] }
 0x68f   :  { %v2040_v17 = vpop.f32.mrf.mxu1  ;;  %v2570_v23 = vadd.f32 %v2569_v40, %v2568_v50  ;;  %3210 = vmatprep.subr.mxu0 %v2641_v47  ;;  %v2738_v40 = vld [vmem:[%s4116_s12 + $0x30] sm:$0xff]  ;;  %v2736_v50 = vld [vmem:[%s4116_s12 + $0x20] sm:$0xff] }
 0x690   :  { %v2554_v10 = vsel %vm82_vm0, %v2040_v17, 0.0  ;;  %3211 = vmatpush3.msra.mxu0 %v2641_v47  ;;  %v2638_v17 = vld [vmem:[%s4114_s10] sm:$0xff] }
 0x691   :  { %v2555_v56 = vadd.f32 %v2554_v10, %v2553_v45  ;;  %3212 = vmatprep.subr.mxu0 %v2640_v38 }
 0x692   :  { %v3184_v18 = vpop.f32.mrf.mxu0  ;;  %3213 = vmatpush3.msra.mxu0 %v2640_v38 }
 0x693   :  { %v2571_v19 = vsel %vm82_vm0, %v3184_v18, 0.0  ;;  %v2639_v18 = vld [vmem:[%s4114_s10 + $0x8] sm:$0xff] }
 0x694   :  { %v2124_v13 = vpop.f32.mrf.mxu0  ;;  %v2572_v15 = vadd.f32 %v2571_v19, %v2570_v23  ;;  %3214 = vmatprep.subr.mxu0 %v2639_v18 }
 0x695   :  { %v2556_v34 = vsel %vm82_vm0, %v2124_v13, 0.0  ;;  %3215 = vmatpush3.msra.mxu0 %v2639_v18  ;;  %v2737_v13 = vld [vmem:[%s4116_s12 + $0x28] sm:$0xff] }
 0x696   :  { %v3189_v20 = vpop.f32.mrf.mxu1  ;;  %v2557_v27 = vadd.f32 %v2556_v34, %v2555_v56  ;;  %3216 = vmatprep.subr.mxu0 %v2638_v17 }
 0x697   :  { %v2573_v30 = vsel %vm82_vm0, %v3189_v20, 0.0  ;;  %3217 = vmatpush3.msra.mxu0 %v2638_v17  ;;  %v2739_v20 = vld [vmem:[%s4116_s12 + $0x38] sm:$0xff] }
 0x698   :  { %v2208_v26 = vpop.f32.mrf.mxu1  ;;  %v2574_v29 = vadd.f32 %v2573_v30, %v2572_v15  ;;  %3221 = vmatprep.subr.mxu1 %v2739_v20  ;;  %v2929_v30 = vld [vmem:[%s4112_s8] ss:$0 sm:$0xff] }
 0x699   :  { %v2558_v57 = vsel %vm82_vm0, %v2208_v26, 0.0  ;;  %3222 = vmatpush3.msra.mxu1 %v2739_v20  ;;  %v2930_v15 = vld [vmem:[%s4113_s9] ss:$0 sm:$0xff] }
 0x69a   :  { %v3194_v41 = vpop.f32.mrf.mxu0  ;;  %v2559_v3 = vadd.f32 %v2558_v57, %v2557_v27  ;;  %3223 = vmatprep.subr.mxu1 %v2738_v40 }
 0x69b   :  { %v2575_v61 = vsel %vm82_vm0, %v3194_v41, 0.0  ;;  %3224 = vmatpush3.msra.mxu1 %v2738_v40 }
 0x69c   :  { %v2292_v28 = vpop.f32.mrf.mxu0  ;;  %v2576_v42 = vadd.f32 %v2575_v61, %v2574_v29  ;;  %3225 = vmatprep.subr.mxu1 %v2737_v13 }
 0x69d   :  { %v2560_v44 = vsel %vm82_vm0, %v2292_v28, 0.0  ;;  %3226 = vmatpush3.msra.mxu1 %v2737_v13 }
 0x69e   :  { %v3199_v39 = vpop.f32.mrf.mxu1  ;;  %v2561_v4 = vadd.f32 %v2560_v44, %v2559_v3  ;;  %3227 = vmatprep.subr.mxu1 %v2736_v50  ;;  %v2735_v44 = vld [vmem:[%s4116_s12 + $0x18] sm:$0xff]  ;;  %v2732_v3 = vld [vmem:[%s4116_s12] sm:$0xff] }
 0x69f   :  { %v2577_v33 = vsel %vm82_vm0, %v3199_v39, 0.0  ;;  %3228 = vmatpush3.msra.mxu1 %v2736_v50 }
 0x6a0   :  { %v2376_v63 = vpop.f32.mrf.mxu1  ;;  %v2578_v43 = vadd.f32 %v2577_v33, %v2576_v42  ;;  %3229 = vmatprep.subr.mxu1 %v2735_v44  ;;  %v2734_v33 = vld [vmem:[%s4116_s12 + $0x10] sm:$0xff]  ;;  %v2931_v42 = vld [vmem:[%s4115_s11] ss:$0 sm:$0xff] }
 0x6a1   :  { %v2562_v46 = vsel %vm82_vm0, %v2376_v63, 0.0  ;;  %3230 = vmatpush3.msra.mxu1 %v2735_v44  ;;  %v2733_v63 = vld [vmem:[%s4116_s12 + $0x8] sm:$0xff]  ;;  %s3407_s12 = smov [#allocation7]  }
 0x6a2   :  { %v2563_v9 = vadd.f32 %v2562_v46, %v2561_v4  ;;  %3231 = vmatprep.subr.mxu1 %v2734_v33  ;;  %s2838_s29 = sshll.u32 %s3407_s12, 4  ;;  %s2839_s29 = int_to_ptr.vmem [resolvable:$true] %s2838_s29 }
 0x6a3   :  { %v3204_v2 = vpop.f32.mrf.mxu0  ;;  %3232 = vmatpush3.msra.mxu1 %v2734_v33  ;;  %s3368_s11 = scalar_lea.vmem %s2839_s29, 256  ;;  %p3373_p11 = scmp.lt.s32.totalorder %s2839_s29, %s2839_s29 }
 0x6a4   :  { %v2579_v8 = vsel %vm82_vm0, %v3204_v2, 0.0  ;;  %3233 = vmatprep.subr.mxu1 %v2733_v63  ;;  %p3369_p10 = scmp.ne.s32.totalorder %s2839_s29, %s3368_s11  ;;  %p3374_p12 = scmp.lt.s32.totalorder %s3368_s11, %s3368_s11 }
 0x6a5   :  { %v2460_v0 = vpop.f32.mrf.mxu0  ;;  %v2580_v55 = vadd.f32 %v2579_v8, %v2578_v43  ;;  %3234 = vmatpush3.msra.mxu1 %v2733_v63 }
 0x6a6   :  { %v2564_v54 = vsel %vm82_vm0, %v2460_v0, 0.0  ;;  %v3209_v59 = vpop.f32.mrf.mxu1  ;;  %3235 = vmatprep.subr.mxu1 %v2732_v3  ;;  %p3375_p13 = por %p3374_p12, %p3373_p11 }
 0x6a7   :  { %v2581_v58 = vsel %vm82_vm0, %v3209_v59, 0.0  ;;  %v2565_v12 = vadd.f32 %v2564_v54, %v2563_v9  ;;  %3236 = vmatpush3.msra.mxu1 %v2732_v3  ;;  %v2934_v9 = vld [vmem:[%s4117_s13] ss:$0 sm:$0xff] }
 0x6a8   :  { %v2582_v11 = vadd.f32 %v2581_v58, %v2580_v55  ;;  %v2544_v62 = vpop.f32.mrf.mxu1  ;;  %p3376_p0 = pnand %p3375_p13, %p3369_p10 }
 0x6a9   :  { %v2566_v52 = vsel %vm82_vm0, %v2544_v62, 0.0 }
 0x6aa   :  { %v2591_v49 = vadd.f32 %v2928_v51, %v2582_v11  ;;  %v2567_v37 = vadd.f32 %v2566_v52, %v2565_v12 }
 0x6ac   :  { %v2590_v53 = vadd.f32 %v2928_v51, %v2567_v37  ;;  %v4032_v16 = vadd.f32 %v3326_v14, %v2591_v49 }
 0x6ae   :  { %v2597_v1 = vsel %vm82_vm0, %v4032_v16, 0.0  ;;  %v4036_v7 = vadd.f32 %v3327_v60, %v2590_v53 }
 0x6af   :  { %2598 = vadd.xlane.f32.xlu1 %v2597_v1 }
 0x6b0   :  { %v2594_v21 = vsel %vm82_vm0, %v4036_v7, 0.0 }
 0x6b1   :  { %2595 = vadd.xlane.f32.xlu0 %v2594_v21 }
 0x738   :  { %v2599_v22 = vpop.xlane.xlu1 %2598 }
 0x739   :  { %v2601_v25 = vmul.f32 0.03125, %v2599_v22 }
 0x73a   :  { %v2596_v24 = vpop.xlane.xlu0 %2595 }
 0x73b   :  { %v2600_v31 = vmul.f32 0.03125, %v2596_v24  ;;  %v2603_v32 = vsub.f32 %v4032_v16, %v2601_v25 }
 0x73d   :  { %v2602_v5 = vsub.f32 %v4036_v7, %v2600_v31  ;;  %v2605_v36 = vmul.f32 %v2603_v32, %v2603_v32 }
 0x73f   :  { %v2604_v6 = vmul.f32 %v2602_v5, %v2602_v5  ;;  %v2609_v48 = vsel %vm82_vm0, %v2605_v36, 0.0 }
 0x741   :  { %v2606_v35 = vsel %vm82_vm0, %v2604_v6, 0.0 }
 0x742   :  { %2607 = vadd.xlane.f32.xlu0 %v2606_v35 }
 0x746   :  { %2610 = vadd.xlane.f32.xlu0 %v2609_v48 }
 0x7cb   :  { %v2608_v10 = vpop.xlane.xlu0 %2607 }
 0x7cc   :  { %v2612_v19 = vmul.f32 0.03125, %v2608_v10 }
 0x7ce   :  { %v2614_v41 = vadd.f32 1e-12, %v2612_v19 }
 0x7cf   :  { %v2611_v23 = vpop.xlane.xlu0 %2610 }
 0x7d0   :  { %3322 = vrsqrt.f32 %v2614_v41  ;;  %v2613_v26 = vmul.f32 0.03125, %v2611_v23 }
 0x7d2   :  { %v2615_v45 = vadd.f32 1e-12, %v2613_v26 }
 0x7d4   :  { %3324 = vrsqrt.f32 %v2615_v45 }
 0x7dd   :  { %v3323_v34 = vpop.eup %3322 }
 0x7de   :  { %v2618_v56 = vmul.f32 %v3323_v34, %v2602_v5 }
 0x7e0   :  { %v2627_v28 = vmul.f32 %v2929_v30, %v2618_v56 }
 0x7e1   :  { %v3325_v57 = vpop.eup %3324 }
 0x7e2   :  { %v2619_v61 = vmul.f32 %v3325_v57, %v2603_v32  ;;  %v2636_v39 = vadd.f32 %v2930_v15, %v2627_v28 }
 0x7e4   :  { %v2628_v27 = vmul.f32 %v2929_v30, %v2619_v61  ;;  %3218 = vmatprep.mubr.msk.f32.mxu0 %vm82_vm0, %v2636_v39 }
 0x7e6   :  { %v2637_v29 = vadd.f32 %v2930_v15, %v2628_v27 }
 0x7e8   :  { %3219 = vmatmul.mubr.msk.f32.vlgmr.msra.gmra.mxu0 %vm82_vm0, %v2637_v29 }
 0x8a8   :  { %v3220_v46 = vpop.f32.mrf.mxu0 }
 0x8a9   :  { %v2727_v2 = vadd.f32 %v3220_v46, %v2931_v42 }
 0x8aa   :  { %v2721_v4 = vpop.f32.mrf.mxu0 }
 0x8ab   :  { %v2722_v43 = vadd.f32 %v2931_v42, %v2721_v4  ;;  %v2731_v0 = vmax.f32 %v2727_v2, 0.0 }
 0x8ad   :  { %v2730_v8 = vmax.f32 %v2722_v43, 0.0 }
 0x8af   :  { %3237 = vmatprep.mubr.msk.f32.mxu1 %vm2747_vm6, %v2730_v8 }
 0x8b0   :  { %3238 = vmatmul.mubr.msk.f32.vlgmr.msra.gmra.mxu1 %vm2747_vm6, %v2731_v0 }
 0x970   :  { %v3239_v55 = vpop.f32.mrf.mxu1 }
 0x971   :  { %v2826_v54 = vadd.f32 %v3239_v55, %v2934_v9 }
 0x972   :  { %v2820_v59 = vpop.f32.mrf.mxu1 }
 0x973   :  { %v2830_v58 = vadd.f32 %v2826_v54, %v4032_v16  ;;  %v2821_v51 = vadd.f32 %v2934_v9, %v2820_v59 }
 0x975   :  { %2832 = vst.msk [vmem:[#allocation7 + $0x8] sm:$0xff] %vm82_vm0, %v2830_v58  ;;  %v2829_v12 = vadd.f32 %v2821_v51, %v4036_v7 }
 0x977   :  { %2831 = vst.msk [vmem:[#allocation7] sm:$0xff] %vm82_vm0, %v2829_v12 }
 0x978   :  { %3379 = shalt.err (!%p3376_p0)
}
 0x979   :  { %2844 = dma.vmem_to_hbm [thread:$0]  %s2839_s29, 256, %s4118_s14, [#allocation4], %s3395_s16, %s3395_s16, %s3396_s17  }
 0x97a   :  { %3392 = dma.done.wait [#allocation4], 256  }
 0x97b   :  { %3393 = vsyncadd [#allocation4], 4294967040 }
 0x97c   :  { %2848 = vsyncpa [#allocation3], 1 }
 0x97d   :  { %2849 = vsyncpa [#allocation6], 1 }
 0x97e   :  { %2850 = vsyncpa [#allocation4], 1 }

</bundles_post_ra>
